<compile_context>
chip_gen: v6e
topology: v6e:2x2x1
jax: 0.10.0
libtpu: 0.0.40
codegen_flags: <defaults>
</compile_context>

<pallas_src>
import functools

import jax
import jax.numpy as jnp
from jax.experimental import pallas as pl
from jax.experimental.pallas import tpu as pltpu

# ---------------------------- model hyper-params ----------------------------
VOCAB = 50
B = 2          # batch
S = 8          # sequence length
H = 32         # hidden size
NUM_HEADS = 2
DH = H // NUM_HEADS
FFN = 64
NUM_LAYERS = 2
LN_EPS = 1e-12
SCALE = 1.0 / (DH ** 0.5)
VEC_ROWS = 8               # (8,128)-aligned bias/LN slab; rows 0..2 used


def _layernorm(x, g, b):
    mu = jnp.mean(x, axis=-1, keepdims=True)
    var = jnp.mean((x - mu) ** 2, axis=-1, keepdims=True)
    return (x - mu) * jax.lax.rsqrt(var + LN_EPS) * g + b


# ---------------------- fused encoder + pooling kernel -----------------------
def fused_encoder_kernel(x_emb_ref, mask_ref, wproj_ref, wffn_ref, vecs_ref,
                         out_ref):
    # Whole forward pass in one grid-less invocation; activations live in vregs.
    x = x_emb_ref[...].reshape(B * S, H).astype(jnp.float32)      # (B*S, H)
    m = mask_ref[...]                                             # (B, S) f32 {0,1}

    # Mask-derived additive attention bias, computed once for all layers.
    # NOTE: a fully padded sequence would give uniform attention (matches
    # typical reference behavior); example inputs always have >=1 valid token.
    neg = (1.0 - m) * (-1e9)                                      # (B, S)
    attn_bias = jnp.broadcast_to(neg[:, None, :], (B, S, S))      # (B, Sq, Sk)

    for layer in range(NUM_LAYERS):            # static, fully unrolled
        # ---- packed per-layer weights (all resident in VMEM) ----
        wproj = wproj_ref[layer]               # (H, 4H) lane-dense = [Wq|Wk|Wv|Wo]
        w_qkv = wproj[:, :3 * H]               # (H, 3H)
        w_o = wproj[:, 3 * H:]                 # (H, H)

        wffn = wffn_ref[layer]                 # (H, 2*FFN) lane-dense = [W1 | W2^T]
        w1 = wffn[:, :FFN]                     # (H, FFN)
        w2t = wffn[:, FFN:]                    # (H, FFN) == W2^T

        vecs = vecs_ref[layer]                 # (8, 128) lane-dense bias/LN slab
        b_qkv = vecs[0:1, :3 * H]              # (1, 3H) = [bq|bk|bv]
        b_o = vecs[0:1, 3 * H:4 * H]           # (1, H)
        ln1g = vecs[1:2, 0:H]
        ln1b = vecs[1:2, H:2 * H]
        ln2g = vecs[1:2, 2 * H:3 * H]
        ln2b = vecs[1:2, 3 * H:4 * H]
        b1 = vecs[2:3, 0:FFN]                  # (1, FFN)
        b2 = vecs[2:3, FFN:FFN + H]            # (1, H)

        # ---- fused QKV projection: one matmul + one fused bias add ----
        qkv = jnp.dot(x, w_qkv, preferred_element_type=jnp.float32) + b_qkv
        q = qkv[:, 0 * H:1 * H]
        k = qkv[:, 1 * H:2 * H]
        v = qkv[:, 2 * H:3 * H]

        # ---- multi-head attention: static 2-head loop, batched 3-D dots;
        #      head contexts folded directly into Wo slices (no concat) ----
        attn2d = None
        for h in range(NUM_HEADS):
            sl = slice(h * DH, (h + 1) * DH)
            qh = q[:, sl].reshape(B, S, DH)
            kh = k[:, sl].reshape(B, S, DH)
            vh = v[:, sl].reshape(B, S, DH)
            scores = jax.lax.dot_general(
                qh, kh, (((2,), (2,)), ((0,), (0,))),
                preferred_element_type=jnp.float32) * SCALE + attn_bias  # (B,S,S)
            smax = jnp.max(scores, axis=-1, keepdims=True)
            p = jnp.exp(scores - smax)
            p = p * pl.reciprocal(jnp.sum(p, axis=-1, keepdims=True), approx=True)
            ctx = jax.lax.dot_general(
                p, vh, (((2,), (1,)), ((0,), (0,))),
                preferred_element_type=jnp.float32)                     # (B,S,DH)
            part = jnp.dot(ctx.reshape(B * S, DH), w_o[sl, :],
                           preferred_element_type=jnp.float32)
            attn2d = part if attn2d is None else attn2d + part
        attn2d = attn2d + b_o

        h1 = _layernorm(x + attn2d, ln1g, ln1b)                          # (B*S, H)

        # ---- feed-forward ----
        ff = jnp.dot(h1, w1, preferred_element_type=jnp.float32) + b1
        # TODO(synk): HF BERT checkpoints use exact (erf) GELU; tanh approximation kept here.
        ff = jax.nn.gelu(ff, approximate=True)
        ff2 = jax.lax.dot_general(ff, w2t, (((1,), (1,)), ((), ())),
                                  preferred_element_type=jnp.float32) + b2
        x = _layernorm(h1 + ff2, ln2g, ln2b)                             # (B*S, H)

    # ---- masked mean pooling (exact divide by the clamped token count) ----
    x3 = x.reshape(B, S, H)
    pooled = jax.lax.dot_general(
        m[:, None, :], x3, (((2,), (1,)), ((0,), (0,))),
        preferred_element_type=jnp.float32)                              # (B, 1, H)
    denom = jnp.maximum(jnp.sum(m, axis=-1, keepdims=True), 1e-9)        # (B, 1)
    out_ref[...] = (pooled[:, 0, :] / denom).astype(out_ref.dtype)


def fused_encoder(x_emb, mask, wproj, wffn, vecs):
    """x_emb: (B,S,H) f32, mask: (B,S) f32, stacked per-layer weight slabs."""
    vmem = pl.BlockSpec(memory_space=pltpu.MemorySpace.VMEM)
    return pl.pallas_call(
        fused_encoder_kernel,
        out_shape=jax.ShapeDtypeStruct((B, H), jnp.float32),
        in_specs=[vmem, vmem, vmem, vmem, vmem],
        out_specs=pl.BlockSpec(memory_space=pltpu.MemorySpace.VMEM),
    )(x_emb, mask, wproj, wffn, vecs)


# ------------------------------ parameter init ------------------------------
def init_params(key):
    def nrm(k, shape, scale=0.02):
        return (scale * jax.random.normal(k, shape)).astype(jnp.float32)

    keys = jax.random.split(key, 2 + NUM_LAYERS)
    tok_emb = nrm(keys[0], (VOCAB, H))
    pos_emb = nrm(keys[1], (S, H))

    wproj_l, wffn_l, vecs_l = [], [], []
    for li in range(NUM_LAYERS):
        lk = jax.random.split(keys[2 + li], 12)
        wq = nrm(lk[0], (H, H)); wk = nrm(lk[1], (H, H))
        wv = nrm(lk[2], (H, H)); wo = nrm(lk[3], (H, H))
        w1 = nrm(lk[4], (H, FFN)); w2 = nrm(lk[5], (FFN, H))

        bq = nrm(lk[6], (H,), 0.01); bk = nrm(lk[7], (H,), 0.01)
        bv = nrm(lk[8], (H,), 0.01); bo = nrm(lk[9], (H,), 0.01)
        b1 = nrm(lk[10], (FFN,), 0.01); b2 = nrm(lk[11], (H,), 0.01)
        ln1g = jnp.ones((H,), jnp.float32); ln1b = jnp.zeros((H,), jnp.float32)
        ln2g = jnp.ones((H,), jnp.float32); ln2b = jnp.zeros((H,), jnp.float32)

        # (H, 4H) lane-dense projection slab: [Wq | Wk | Wv | Wo]
        wproj_l.append(jnp.concatenate([wq, wk, wv, wo], axis=1))
        # (H, 2*FFN) = (32, 128) lane-dense FFN slab: [W1 | W2^T]
        wffn_l.append(jnp.concatenate([w1, w2.T], axis=1))
        # (8, 128) lane-dense bias / LayerNorm slab.
        row0 = jnp.concatenate([bq, bk, bv, bo])                     # (128,)
        row1 = jnp.concatenate([ln1g, ln1b, ln2g, ln2b])             # (128,)
        row2 = jnp.concatenate(
            [b1, b2, jnp.zeros((4 * H - FFN - H,), jnp.float32)])    # (128,)
        vecs = jnp.stack([row0, row1, row2], axis=0)                 # (3, 128)
        vecs = jnp.pad(vecs, ((0, VEC_ROWS - 3), (0, 0)))            # (8, 128)
        vecs_l.append(vecs)

    return (tok_emb, pos_emb,
            jnp.stack(wproj_l, axis=0),      # (L, H, 4H)
            jnp.stack(wffn_l, axis=0),       # (L, H, 2*FFN)
            jnp.stack(vecs_l, axis=0))       # (L, 8, 128)


# ------------------------------- forward pass -------------------------------
@functools.partial(jax.jit)
def sentence_transformer_forward(input_ids, attention_mask,
                                 tok_emb, pos_emb, wproj, wffn, vecs):
    # Embedding lookup (glue, plain JAX gather).
    x = jnp.take(tok_emb, input_ids, axis=0) + pos_emb[None, :, :]   # (B,S,H)
    x = x.astype(jnp.float32)
    mask = attention_mask.astype(jnp.float32)                        # (B,S)
    # Single fused Pallas kernel: all encoder layers + masked mean pooling.
    return fused_encoder(x, mask, wproj, wffn, vecs)                 # (B,H)


if __name__ == "__main__":
    key = jax.random.PRNGKey(0)
    k_ids, k_params = jax.random.split(key)

    input_ids = jax.random.randint(k_ids, (B, S), 0, VOCAB, dtype=jnp.int32)
    attention_mask = jnp.array(
        [[1, 1, 1, 1, 1, 1, 1, 1],
         [1, 1, 1, 1, 1, 0, 0, 0]], dtype=jnp.int32)

    tok_emb, pos_emb, wproj, wffn, vecs = init_params(k_params)

    emb = sentence_transformer_forward(input_ids, attention_mask,
                                       tok_emb, pos_emb, wproj, wffn, vecs)
    emb = jax.block_until_ready(emb)
    assert emb.shape == (B, H) and emb.dtype == jnp.float32
    assert bool(jnp.all(jnp.isfinite(emb)))
    print("KERNEL_OK")
</pallas_src>

<mosaic_0001>
module attributes {stable_mosaic.version = 11 : i64} {
  func.func @fused_encoder_kernel(%arg0: memref<2x8x32xf32, #tpu.memory_space<vmem>>, %arg1: memref<2x8xf32, #tpu.memory_space<vmem>>, %arg2: memref<2x32x128xf32, #tpu.memory_space<vmem>>, %arg3: memref<2x32x128xf32, #tpu.memory_space<vmem>>, %arg4: memref<2x8x128xf32, #tpu.memory_space<vmem>>, %arg5: memref<2x32xf32, #tpu.memory_space<vmem>>) attributes {dimension_semantics = [], scalar_prefetch = 0 : i64, scratch_operands = 0 : i64, tpu.core_type = #tpu.core_type<tc>} {
    %c0 = arith.constant 0 : index
    %c0_0 = arith.constant 0 : index
    %c0_1 = arith.constant 0 : index
    %0 = vector.load %arg0[%c0, %c0_0, %c0_1] : memref<2x8x32xf32, #tpu.memory_space<vmem>>, vector<2x8x32xf32>
    %1 = vector.shape_cast %0 : vector<2x8x32xf32> to vector<16x32xf32>
    %c0_2 = arith.constant 0 : index
    %c0_3 = arith.constant 0 : index
    %2 = vector.load %arg1[%c0_2, %c0_3] : memref<2x8xf32, #tpu.memory_space<vmem>>, vector<2x8xf32>
    %cst = arith.constant 1.000000e+00 : f32
    %3 = vector.broadcast %cst : f32 to vector<2x8xf32>
    %4 = arith.subf %3, %2 : vector<2x8xf32>
    %cst_4 = arith.constant -1.000000e+09 : f32
    %5 = vector.broadcast %cst_4 : f32 to vector<2x8xf32>
    %6 = arith.mulf %4, %5 : vector<2x8xf32>
    %7 = vector.shape_cast %6 : vector<2x8xf32> to vector<2x1x8xf32>
    %8 = vector.shape_cast %7 : vector<2x1x8xf32> to vector<2x1x8xf32>
    %9 = vector.broadcast %8 : vector<2x1x8xf32> to vector<2x8x8xf32>
    %c0_5 = arith.constant 0 : index
    %c0_6 = arith.constant 0 : index
    %c0_7 = arith.constant 0 : index
    %10 = vector.load %arg2[%c0_5, %c0_6, %c0_7] : memref<2x32x128xf32, #tpu.memory_space<vmem>>, vector<1x32x128xf32>
    %11 = vector.shape_cast %10 : vector<1x32x128xf32> to vector<32x128xf32>
    %12 = vector.extract_strided_slice %11 {offsets = [0, 0], sizes = [32, 96], strides = [1, 1]} : vector<32x128xf32> to vector<32x96xf32>
    %13 = vector.extract_strided_slice %11 {offsets = [0, 96], sizes = [32, 32], strides = [1, 1]} : vector<32x128xf32> to vector<32x32xf32>
    %c0_8 = arith.constant 0 : index
    %c0_9 = arith.constant 0 : index
    %c0_10 = arith.constant 0 : index
    %14 = vector.load %arg3[%c0_8, %c0_9, %c0_10] : memref<2x32x128xf32, #tpu.memory_space<vmem>>, vector<1x32x128xf32>
    %15 = vector.shape_cast %14 : vector<1x32x128xf32> to vector<32x128xf32>
    %16 = vector.extract_strided_slice %15 {offsets = [0, 0], sizes = [32, 64], strides = [1, 1]} : vector<32x128xf32> to vector<32x64xf32>
    %17 = vector.extract_strided_slice %15 {offsets = [0, 64], sizes = [32, 64], strides = [1, 1]} : vector<32x128xf32> to vector<32x64xf32>
    %c0_11 = arith.constant 0 : index
    %c0_12 = arith.constant 0 : index
    %c0_13 = arith.constant 0 : index
    %18 = vector.load %arg4[%c0_11, %c0_12, %c0_13] : memref<2x8x128xf32, #tpu.memory_space<vmem>>, vector<1x8x128xf32>
    %19 = vector.shape_cast %18 : vector<1x8x128xf32> to vector<8x128xf32>
    %20 = vector.extract_strided_slice %19 {offsets = [0, 0], sizes = [1, 96], strides = [1, 1]} : vector<8x128xf32> to vector<1x96xf32>
    %21 = vector.extract_strided_slice %19 {offsets = [0, 96], sizes = [1, 32], strides = [1, 1]} : vector<8x128xf32> to vector<1x32xf32>
    %22 = vector.extract_strided_slice %19 {offsets = [1, 0], sizes = [1, 32], strides = [1, 1]} : vector<8x128xf32> to vector<1x32xf32>
    %23 = vector.extract_strided_slice %19 {offsets = [1, 32], sizes = [1, 32], strides = [1, 1]} : vector<8x128xf32> to vector<1x32xf32>
    %24 = vector.extract_strided_slice %19 {offsets = [1, 64], sizes = [1, 32], strides = [1, 1]} : vector<8x128xf32> to vector<1x32xf32>
    %25 = vector.extract_strided_slice %19 {offsets = [1, 96], sizes = [1, 32], strides = [1, 1]} : vector<8x128xf32> to vector<1x32xf32>
    %26 = vector.extract_strided_slice %19 {offsets = [2, 0], sizes = [1, 64], strides = [1, 1]} : vector<8x128xf32> to vector<1x64xf32>
    %27 = vector.extract_strided_slice %19 {offsets = [2, 64], sizes = [1, 32], strides = [1, 1]} : vector<8x128xf32> to vector<1x32xf32>
    %cst_14 = arith.constant dense<0.000000e+00> : vector<16x96xf32>
    %28 = tpu.matmul %1, %12, %cst_14 {dimension_numbers = #tpu.dot_dimension_numbers<[1], [0], [0], [1], [0, 0, 1, 1], [], []>} : vector<16x32xf32>, vector<32x96xf32>, vector<16x96xf32> -> vector<16x96xf32>
    %29 = vector.broadcast %20 : vector<1x96xf32> to vector<16x96xf32>
    %30 = arith.addf %28, %29 : vector<16x96xf32>
    %31 = vector.extract_strided_slice %30 {offsets = [0, 0], sizes = [16, 32], strides = [1, 1]} : vector<16x96xf32> to vector<16x32xf32>
    %32 = vector.extract_strided_slice %30 {offsets = [0, 32], sizes = [16, 32], strides = [1, 1]} : vector<16x96xf32> to vector<16x32xf32>
    %33 = vector.extract_strided_slice %30 {offsets = [0, 64], sizes = [16, 32], strides = [1, 1]} : vector<16x96xf32> to vector<16x32xf32>
    %34 = vector.extract_strided_slice %31 {offsets = [0, 0], sizes = [16, 16], strides = [1, 1]} : vector<16x32xf32> to vector<16x16xf32>
    %35 = vector.shape_cast %34 : vector<16x16xf32> to vector<2x8x16xf32>
    %36 = vector.extract_strided_slice %32 {offsets = [0, 0], sizes = [16, 16], strides = [1, 1]} : vector<16x32xf32> to vector<16x16xf32>
    %37 = vector.shape_cast %36 : vector<16x16xf32> to vector<2x8x16xf32>
    %38 = vector.extract_strided_slice %33 {offsets = [0, 0], sizes = [16, 16], strides = [1, 1]} : vector<16x32xf32> to vector<16x16xf32>
    %39 = vector.shape_cast %38 : vector<16x16xf32> to vector<2x8x16xf32>
    %cst_15 = arith.constant dense<0.000000e+00> : vector<2x8x8xf32>
    %40 = tpu.matmul %35, %37, %cst_15 {dimension_numbers = #tpu.dot_dimension_numbers<[2], [2], [1], [1], [0, 0, 0, 1, 1, 1], [0], [0]>} : vector<2x8x16xf32>, vector<2x8x16xf32>, vector<2x8x8xf32> -> vector<2x8x8xf32>
    %cst_16 = arith.constant 2.500000e-01 : f32
    %41 = vector.broadcast %cst_16 : f32 to vector<2x8x8xf32>
    %42 = arith.mulf %40, %41 : vector<2x8x8xf32>
    %43 = arith.addf %42, %9 : vector<2x8x8xf32>
    %cst_17 = arith.constant dense<0xFF800000> : vector<2x8xf32>
    %44 = vector.multi_reduction <maximumf>, %43, %cst_17 [2] : vector<2x8x8xf32> to vector<2x8xf32>
    %45 = vector.shape_cast %44 : vector<2x8xf32> to vector<2x8x1xf32>
    %46 = vector.broadcast %45 : vector<2x8x1xf32> to vector<2x8x8xf32>
    %47 = arith.subf %43, %46 : vector<2x8x8xf32>
    %48 = math.exp %47 : vector<2x8x8xf32>
    %cst_18 = arith.constant dense<0.000000e+00> : vector<2x8xf32>
    %49 = vector.multi_reduction <add>, %48, %cst_18 [2] : vector<2x8x8xf32> to vector<2x8xf32>
    %50 = vector.shape_cast %49 : vector<2x8xf32> to vector<2x8x1xf32>
    %51 = tpu.reciprocal %50 {approx = true} : vector<2x8x1xf32> -> vector<2x8x1xf32>
    %52 = vector.broadcast %51 : vector<2x8x1xf32> to vector<2x8x8xf32>
    %53 = arith.mulf %48, %52 : vector<2x8x8xf32>
    %cst_19 = arith.constant dense<0.000000e+00> : vector<2x8x16xf32>
    %54 = tpu.matmul %53, %39, %cst_19 {dimension_numbers = #tpu.dot_dimension_numbers<[2], [1], [1], [2], [0, 0, 0, 1, 1, 2], [0], [0]>} : vector<2x8x8xf32>, vector<2x8x16xf32>, vector<2x8x16xf32> -> vector<2x8x16xf32>
    %55 = vector.shape_cast %54 : vector<2x8x16xf32> to vector<16x16xf32>
    %56 = vector.extract_strided_slice %13 {offsets = [0, 0], sizes = [16, 32], strides = [1, 1]} : vector<32x32xf32> to vector<16x32xf32>
    %cst_20 = arith.constant dense<0.000000e+00> : vector<16x32xf32>
    %57 = tpu.matmul %55, %56, %cst_20 {dimension_numbers = #tpu.dot_dimension_numbers<[1], [0], [0], [1], [0, 0, 1, 1], [], []>} : vector<16x16xf32>, vector<16x32xf32>, vector<16x32xf32> -> vector<16x32xf32>
    %58 = vector.extract_strided_slice %31 {offsets = [0, 16], sizes = [16, 16], strides = [1, 1]} : vector<16x32xf32> to vector<16x16xf32>
    %59 = vector.shape_cast %58 : vector<16x16xf32> to vector<2x8x16xf32>
    %60 = vector.extract_strided_slice %32 {offsets = [0, 16], sizes = [16, 16], strides = [1, 1]} : vector<16x32xf32> to vector<16x16xf32>
    %61 = vector.shape_cast %60 : vector<16x16xf32> to vector<2x8x16xf32>
    %62 = vector.extract_strided_slice %33 {offsets = [0, 16], sizes = [16, 16], strides = [1, 1]} : vector<16x32xf32> to vector<16x16xf32>
    %63 = vector.shape_cast %62 : vector<16x16xf32> to vector<2x8x16xf32>
    %cst_21 = arith.constant dense<0.000000e+00> : vector<2x8x8xf32>
    %64 = tpu.matmul %59, %61, %cst_21 {dimension_numbers = #tpu.dot_dimension_numbers<[2], [2], [1], [1], [0, 0, 0, 1, 1, 1], [0], [0]>} : vector<2x8x16xf32>, vector<2x8x16xf32>, vector<2x8x8xf32> -> vector<2x8x8xf32>
    %cst_22 = arith.constant 2.500000e-01 : f32
    %65 = vector.broadcast %cst_22 : f32 to vector<2x8x8xf32>
    %66 = arith.mulf %64, %65 : vector<2x8x8xf32>
    %67 = arith.addf %66, %9 : vector<2x8x8xf32>
    %cst_23 = arith.constant dense<0xFF800000> : vector<2x8xf32>
    %68 = vector.multi_reduction <maximumf>, %67, %cst_23 [2] : vector<2x8x8xf32> to vector<2x8xf32>
    %69 = vector.shape_cast %68 : vector<2x8xf32> to vector<2x8x1xf32>
    %70 = vector.broadcast %69 : vector<2x8x1xf32> to vector<2x8x8xf32>
    %71 = arith.subf %67, %70 : vector<2x8x8xf32>
    %72 = math.exp %71 : vector<2x8x8xf32>
    %cst_24 = arith.constant dense<0.000000e+00> : vector<2x8xf32>
    %73 = vector.multi_reduction <add>, %72, %cst_24 [2] : vector<2x8x8xf32> to vector<2x8xf32>
    %74 = vector.shape_cast %73 : vector<2x8xf32> to vector<2x8x1xf32>
    %75 = tpu.reciprocal %74 {approx = true} : vector<2x8x1xf32> -> vector<2x8x1xf32>
    %76 = vector.broadcast %75 : vector<2x8x1xf32> to vector<2x8x8xf32>
    %77 = arith.mulf %72, %76 : vector<2x8x8xf32>
    %cst_25 = arith.constant dense<0.000000e+00> : vector<2x8x16xf32>
    %78 = tpu.matmul %77, %63, %cst_25 {dimension_numbers = #tpu.dot_dimension_numbers<[2], [1], [1], [2], [0, 0, 0, 1, 1, 2], [0], [0]>} : vector<2x8x8xf32>, vector<2x8x16xf32>, vector<2x8x16xf32> -> vector<2x8x16xf32>
    %79 = vector.shape_cast %78 : vector<2x8x16xf32> to vector<16x16xf32>
    %80 = vector.extract_strided_slice %13 {offsets = [16, 0], sizes = [16, 32], strides = [1, 1]} : vector<32x32xf32> to vector<16x32xf32>
    %cst_26 = arith.constant dense<0.000000e+00> : vector<16x32xf32>
    %81 = tpu.matmul %79, %80, %cst_26 {dimension_numbers = #tpu.dot_dimension_numbers<[1], [0], [0], [1], [0, 0, 1, 1], [], []>} : vector<16x16xf32>, vector<16x32xf32>, vector<16x32xf32> -> vector<16x32xf32>
    %82 = arith.addf %57, %81 : vector<16x32xf32>
    %83 = vector.broadcast %21 : vector<1x32xf32> to vector<16x32xf32>
    %84 = arith.addf %82, %83 : vector<16x32xf32>
    %85 = arith.addf %1, %84 : vector<16x32xf32>
    %cst_27 = arith.constant dense<0.000000e+00> : vector<16xf32>
    %86 = vector.multi_reduction <add>, %85, %cst_27 [1] : vector<16x32xf32> to vector<16xf32>
    %87 = vector.shape_cast %86 : vector<16xf32> to vector<16x1xf32>
    %cst_28 = arith.constant 3.200000e+01 : f32
    %88 = vector.broadcast %cst_28 : f32 to vector<16x1xf32>
    %89 = arith.divf %87, %88 : vector<16x1xf32>
    %90 = vector.broadcast %89 : vector<16x1xf32> to vector<16x32xf32>
    %91 = arith.subf %85, %90 : vector<16x32xf32>
    %92 = arith.mulf %91, %91 : vector<16x32xf32>
    %cst_29 = arith.constant dense<0.000000e+00> : vector<16xf32>
    %93 = vector.multi_reduction <add>, %92, %cst_29 [1] : vector<16x32xf32> to vector<16xf32>
    %94 = vector.shape_cast %93 : vector<16xf32> to vector<16x1xf32>
    %cst_30 = arith.constant 3.200000e+01 : f32
    %95 = vector.broadcast %cst_30 : f32 to vector<16x1xf32>
    %96 = arith.divf %94, %95 : vector<16x1xf32>
    %97 = vector.broadcast %89 : vector<16x1xf32> to vector<16x32xf32>
    %98 = arith.subf %85, %97 : vector<16x32xf32>
    %cst_31 = arith.constant 9.99999996E-13 : f32
    %99 = vector.broadcast %cst_31 : f32 to vector<16x1xf32>
    %100 = arith.addf %96, %99 : vector<16x1xf32>
    %101 = math.rsqrt %100 : vector<16x1xf32>
    %102 = vector.broadcast %101 : vector<16x1xf32> to vector<16x32xf32>
    %103 = arith.mulf %98, %102 : vector<16x32xf32>
    %104 = vector.broadcast %22 : vector<1x32xf32> to vector<16x32xf32>
    %105 = arith.mulf %103, %104 : vector<16x32xf32>
    %106 = vector.broadcast %23 : vector<1x32xf32> to vector<16x32xf32>
    %107 = arith.addf %105, %106 : vector<16x32xf32>
    %cst_32 = arith.constant dense<0.000000e+00> : vector<16x64xf32>
    %108 = tpu.matmul %107, %16, %cst_32 {dimension_numbers = #tpu.dot_dimension_numbers<[1], [0], [0], [1], [0, 0, 1, 1], [], []>} : vector<16x32xf32>, vector<32x64xf32>, vector<16x64xf32> -> vector<16x64xf32>
    %109 = vector.broadcast %26 : vector<1x64xf32> to vector<16x64xf32>
    %110 = arith.addf %108, %109 : vector<16x64xf32>
    %111 = arith.mulf %110, %110 : vector<16x64xf32>
    %112 = arith.mulf %110, %111 : vector<16x64xf32>
    %cst_33 = arith.constant 4.471500e-02 : f32
    %113 = vector.broadcast %cst_33 : f32 to vector<16x64xf32>
    %114 = arith.mulf %113, %112 : vector<16x64xf32>
    %115 = arith.addf %110, %114 : vector<16x64xf32>
    %cst_34 = arith.constant 0.797884583 : f32
    %116 = vector.broadcast %cst_34 : f32 to vector<16x64xf32>
    %117 = arith.mulf %116, %115 : vector<16x64xf32>
    %118 = math.tanh %117 : vector<16x64xf32>
    %cst_35 = arith.constant 1.000000e+00 : f32
    %119 = vector.broadcast %cst_35 : f32 to vector<16x64xf32>
    %120 = arith.addf %119, %118 : vector<16x64xf32>
    %cst_36 = arith.constant 5.000000e-01 : f32
    %121 = vector.broadcast %cst_36 : f32 to vector<16x64xf32>
    %122 = arith.mulf %121, %120 : vector<16x64xf32>
    %123 = arith.mulf %110, %122 : vector<16x64xf32>
    %cst_37 = arith.constant dense<0.000000e+00> : vector<16x32xf32>
    %124 = tpu.matmul %123, %17, %cst_37 {dimension_numbers = #tpu.dot_dimension_numbers<[1], [1], [0], [0], [0, 0, 1, 0], [], []>} : vector<16x64xf32>, vector<32x64xf32>, vector<16x32xf32> -> vector<16x32xf32>
    %125 = vector.broadcast %27 : vector<1x32xf32> to vector<16x32xf32>
    %126 = arith.addf %124, %125 : vector<16x32xf32>
    %127 = arith.addf %107, %126 : vector<16x32xf32>
    %cst_38 = arith.constant dense<0.000000e+00> : vector<16xf32>
    %128 = vector.multi_reduction <add>, %127, %cst_38 [1] : vector<16x32xf32> to vector<16xf32>
    %129 = vector.shape_cast %128 : vector<16xf32> to vector<16x1xf32>
    %cst_39 = arith.constant 3.200000e+01 : f32
    %130 = vector.broadcast %cst_39 : f32 to vector<16x1xf32>
    %131 = arith.divf %129, %130 : vector<16x1xf32>
    %132 = vector.broadcast %131 : vector<16x1xf32> to vector<16x32xf32>
    %133 = arith.subf %127, %132 : vector<16x32xf32>
    %134 = arith.mulf %133, %133 : vector<16x32xf32>
    %cst_40 = arith.constant dense<0.000000e+00> : vector<16xf32>
    %135 = vector.multi_reduction <add>, %134, %cst_40 [1] : vector<16x32xf32> to vector<16xf32>
    %136 = vector.shape_cast %135 : vector<16xf32> to vector<16x1xf32>
    %cst_41 = arith.constant 3.200000e+01 : f32
    %137 = vector.broadcast %cst_41 : f32 to vector<16x1xf32>
    %138 = arith.divf %136, %137 : vector<16x1xf32>
    %139 = vector.broadcast %131 : vector<16x1xf32> to vector<16x32xf32>
    %140 = arith.subf %127, %139 : vector<16x32xf32>
    %cst_42 = arith.constant 9.99999996E-13 : f32
    %141 = vector.broadcast %cst_42 : f32 to vector<16x1xf32>
    %142 = arith.addf %138, %141 : vector<16x1xf32>
    %143 = math.rsqrt %142 : vector<16x1xf32>
    %144 = vector.broadcast %143 : vector<16x1xf32> to vector<16x32xf32>
    %145 = arith.mulf %140, %144 : vector<16x32xf32>
    %146 = vector.broadcast %24 : vector<1x32xf32> to vector<16x32xf32>
    %147 = arith.mulf %145, %146 : vector<16x32xf32>
    %148 = vector.broadcast %25 : vector<1x32xf32> to vector<16x32xf32>
    %149 = arith.addf %147, %148 : vector<16x32xf32>
    %c1 = arith.constant 1 : index
    %c0_43 = arith.constant 0 : index
    %c0_44 = arith.constant 0 : index
    %150 = vector.load %arg2[%c1, %c0_43, %c0_44] : memref<2x32x128xf32, #tpu.memory_space<vmem>>, vector<1x32x128xf32>
    %151 = vector.shape_cast %150 : vector<1x32x128xf32> to vector<32x128xf32>
    %152 = vector.extract_strided_slice %151 {offsets = [0, 0], sizes = [32, 96], strides = [1, 1]} : vector<32x128xf32> to vector<32x96xf32>
    %153 = vector.extract_strided_slice %151 {offsets = [0, 96], sizes = [32, 32], strides = [1, 1]} : vector<32x128xf32> to vector<32x32xf32>
    %c1_45 = arith.constant 1 : index
    %c0_46 = arith.constant 0 : index
    %c0_47 = arith.constant 0 : index
    %154 = vector.load %arg3[%c1_45, %c0_46, %c0_47] : memref<2x32x128xf32, #tpu.memory_space<vmem>>, vector<1x32x128xf32>
    %155 = vector.shape_cast %154 : vector<1x32x128xf32> to vector<32x128xf32>
    %156 = vector.extract_strided_slice %155 {offsets = [0, 0], sizes = [32, 64], strides = [1, 1]} : vector<32x128xf32> to vector<32x64xf32>
    %157 = vector.extract_strided_slice %155 {offsets = [0, 64], sizes = [32, 64], strides = [1, 1]} : vector<32x128xf32> to vector<32x64xf32>
    %c1_48 = arith.constant 1 : index
    %c0_49 = arith.constant 0 : index
    %c0_50 = arith.constant 0 : index
    %158 = vector.load %arg4[%c1_48, %c0_49, %c0_50] : memref<2x8x128xf32, #tpu.memory_space<vmem>>, vector<1x8x128xf32>
    %159 = vector.shape_cast %158 : vector<1x8x128xf32> to vector<8x128xf32>
    %160 = vector.extract_strided_slice %159 {offsets = [0, 0], sizes = [1, 96], strides = [1, 1]} : vector<8x128xf32> to vector<1x96xf32>
    %161 = vector.extract_strided_slice %159 {offsets = [0, 96], sizes = [1, 32], strides = [1, 1]} : vector<8x128xf32> to vector<1x32xf32>
    %162 = vector.extract_strided_slice %159 {offsets = [1, 0], sizes = [1, 32], strides = [1, 1]} : vector<8x128xf32> to vector<1x32xf32>
    %163 = vector.extract_strided_slice %159 {offsets = [1, 32], sizes = [1, 32], strides = [1, 1]} : vector<8x128xf32> to vector<1x32xf32>
    %164 = vector.extract_strided_slice %159 {offsets = [1, 64], sizes = [1, 32], strides = [1, 1]} : vector<8x128xf32> to vector<1x32xf32>
    %165 = vector.extract_strided_slice %159 {offsets = [1, 96], sizes = [1, 32], strides = [1, 1]} : vector<8x128xf32> to vector<1x32xf32>
    %166 = vector.extract_strided_slice %159 {offsets = [2, 0], sizes = [1, 64], strides = [1, 1]} : vector<8x128xf32> to vector<1x64xf32>
    %167 = vector.extract_strided_slice %159 {offsets = [2, 64], sizes = [1, 32], strides = [1, 1]} : vector<8x128xf32> to vector<1x32xf32>
    %cst_51 = arith.constant dense<0.000000e+00> : vector<16x96xf32>
    %168 = tpu.matmul %149, %152, %cst_51 {dimension_numbers = #tpu.dot_dimension_numbers<[1], [0], [0], [1], [0, 0, 1, 1], [], []>} : vector<16x32xf32>, vector<32x96xf32>, vector<16x96xf32> -> vector<16x96xf32>
    %169 = vector.broadcast %160 : vector<1x96xf32> to vector<16x96xf32>
    %170 = arith.addf %168, %169 : vector<16x96xf32>
    %171 = vector.extract_strided_slice %170 {offsets = [0, 0], sizes = [16, 32], strides = [1, 1]} : vector<16x96xf32> to vector<16x32xf32>
    %172 = vector.extract_strided_slice %170 {offsets = [0, 32], sizes = [16, 32], strides = [1, 1]} : vector<16x96xf32> to vector<16x32xf32>
    %173 = vector.extract_strided_slice %170 {offsets = [0, 64], sizes = [16, 32], strides = [1, 1]} : vector<16x96xf32> to vector<16x32xf32>
    %174 = vector.extract_strided_slice %171 {offsets = [0, 0], sizes = [16, 16], strides = [1, 1]} : vector<16x32xf32> to vector<16x16xf32>
    %175 = vector.shape_cast %174 : vector<16x16xf32> to vector<2x8x16xf32>
    %176 = vector.extract_strided_slice %172 {offsets = [0, 0], sizes = [16, 16], strides = [1, 1]} : vector<16x32xf32> to vector<16x16xf32>
    %177 = vector.shape_cast %176 : vector<16x16xf32> to vector<2x8x16xf32>
    %178 = vector.extract_strided_slice %173 {offsets = [0, 0], sizes = [16, 16], strides = [1, 1]} : vector<16x32xf32> to vector<16x16xf32>
    %179 = vector.shape_cast %178 : vector<16x16xf32> to vector<2x8x16xf32>
    %cst_52 = arith.constant dense<0.000000e+00> : vector<2x8x8xf32>
    %180 = tpu.matmul %175, %177, %cst_52 {dimension_numbers = #tpu.dot_dimension_numbers<[2], [2], [1], [1], [0, 0, 0, 1, 1, 1], [0], [0]>} : vector<2x8x16xf32>, vector<2x8x16xf32>, vector<2x8x8xf32> -> vector<2x8x8xf32>
    %cst_53 = arith.constant 2.500000e-01 : f32
    %181 = vector.broadcast %cst_53 : f32 to vector<2x8x8xf32>
    %182 = arith.mulf %180, %181 : vector<2x8x8xf32>
    %183 = arith.addf %182, %9 : vector<2x8x8xf32>
    %cst_54 = arith.constant dense<0xFF800000> : vector<2x8xf32>
    %184 = vector.multi_reduction <maximumf>, %183, %cst_54 [2] : vector<2x8x8xf32> to vector<2x8xf32>
    %185 = vector.shape_cast %184 : vector<2x8xf32> to vector<2x8x1xf32>
    %186 = vector.broadcast %185 : vector<2x8x1xf32> to vector<2x8x8xf32>
    %187 = arith.subf %183, %186 : vector<2x8x8xf32>
    %188 = math.exp %187 : vector<2x8x8xf32>
    %cst_55 = arith.constant dense<0.000000e+00> : vector<2x8xf32>
    %189 = vector.multi_reduction <add>, %188, %cst_55 [2] : vector<2x8x8xf32> to vector<2x8xf32>
    %190 = vector.shape_cast %189 : vector<2x8xf32> to vector<2x8x1xf32>
    %191 = tpu.reciprocal %190 {approx = true} : vector<2x8x1xf32> -> vector<2x8x1xf32>
    %192 = vector.broadcast %191 : vector<2x8x1xf32> to vector<2x8x8xf32>
    %193 = arith.mulf %188, %192 : vector<2x8x8xf32>
    %cst_56 = arith.constant dense<0.000000e+00> : vector<2x8x16xf32>
    %194 = tpu.matmul %193, %179, %cst_56 {dimension_numbers = #tpu.dot_dimension_numbers<[2], [1], [1], [2], [0, 0, 0, 1, 1, 2], [0], [0]>} : vector<2x8x8xf32>, vector<2x8x16xf32>, vector<2x8x16xf32> -> vector<2x8x16xf32>
    %195 = vector.shape_cast %194 : vector<2x8x16xf32> to vector<16x16xf32>
    %196 = vector.extract_strided_slice %153 {offsets = [0, 0], sizes = [16, 32], strides = [1, 1]} : vector<32x32xf32> to vector<16x32xf32>
    %cst_57 = arith.constant dense<0.000000e+00> : vector<16x32xf32>
    %197 = tpu.matmul %195, %196, %cst_57 {dimension_numbers = #tpu.dot_dimension_numbers<[1], [0], [0], [1], [0, 0, 1, 1], [], []>} : vector<16x16xf32>, vector<16x32xf32>, vector<16x32xf32> -> vector<16x32xf32>
    %198 = vector.extract_strided_slice %171 {offsets = [0, 16], sizes = [16, 16], strides = [1, 1]} : vector<16x32xf32> to vector<16x16xf32>
    %199 = vector.shape_cast %198 : vector<16x16xf32> to vector<2x8x16xf32>
    %200 = vector.extract_strided_slice %172 {offsets = [0, 16], sizes = [16, 16], strides = [1, 1]} : vector<16x32xf32> to vector<16x16xf32>
    %201 = vector.shape_cast %200 : vector<16x16xf32> to vector<2x8x16xf32>
    %202 = vector.extract_strided_slice %173 {offsets = [0, 16], sizes = [16, 16], strides = [1, 1]} : vector<16x32xf32> to vector<16x16xf32>
    %203 = vector.shape_cast %202 : vector<16x16xf32> to vector<2x8x16xf32>
    %cst_58 = arith.constant dense<0.000000e+00> : vector<2x8x8xf32>
    %204 = tpu.matmul %199, %201, %cst_58 {dimension_numbers = #tpu.dot_dimension_numbers<[2], [2], [1], [1], [0, 0, 0, 1, 1, 1], [0], [0]>} : vector<2x8x16xf32>, vector<2x8x16xf32>, vector<2x8x8xf32> -> vector<2x8x8xf32>
    %cst_59 = arith.constant 2.500000e-01 : f32
    %205 = vector.broadcast %cst_59 : f32 to vector<2x8x8xf32>
    %206 = arith.mulf %204, %205 : vector<2x8x8xf32>
    %207 = arith.addf %206, %9 : vector<2x8x8xf32>
    %cst_60 = arith.constant dense<0xFF800000> : vector<2x8xf32>
    %208 = vector.multi_reduction <maximumf>, %207, %cst_60 [2] : vector<2x8x8xf32> to vector<2x8xf32>
    %209 = vector.shape_cast %208 : vector<2x8xf32> to vector<2x8x1xf32>
    %210 = vector.broadcast %209 : vector<2x8x1xf32> to vector<2x8x8xf32>
    %211 = arith.subf %207, %210 : vector<2x8x8xf32>
    %212 = math.exp %211 : vector<2x8x8xf32>
    %cst_61 = arith.constant dense<0.000000e+00> : vector<2x8xf32>
    %213 = vector.multi_reduction <add>, %212, %cst_61 [2] : vector<2x8x8xf32> to vector<2x8xf32>
    %214 = vector.shape_cast %213 : vector<2x8xf32> to vector<2x8x1xf32>
    %215 = tpu.reciprocal %214 {approx = true} : vector<2x8x1xf32> -> vector<2x8x1xf32>
    %216 = vector.broadcast %215 : vector<2x8x1xf32> to vector<2x8x8xf32>
    %217 = arith.mulf %212, %216 : vector<2x8x8xf32>
    %cst_62 = arith.constant dense<0.000000e+00> : vector<2x8x16xf32>
    %218 = tpu.matmul %217, %203, %cst_62 {dimension_numbers = #tpu.dot_dimension_numbers<[2], [1], [1], [2], [0, 0, 0, 1, 1, 2], [0], [0]>} : vector<2x8x8xf32>, vector<2x8x16xf32>, vector<2x8x16xf32> -> vector<2x8x16xf32>
    %219 = vector.shape_cast %218 : vector<2x8x16xf32> to vector<16x16xf32>
    %220 = vector.extract_strided_slice %153 {offsets = [16, 0], sizes = [16, 32], strides = [1, 1]} : vector<32x32xf32> to vector<16x32xf32>
    %cst_63 = arith.constant dense<0.000000e+00> : vector<16x32xf32>
    %221 = tpu.matmul %219, %220, %cst_63 {dimension_numbers = #tpu.dot_dimension_numbers<[1], [0], [0], [1], [0, 0, 1, 1], [], []>} : vector<16x16xf32>, vector<16x32xf32>, vector<16x32xf32> -> vector<16x32xf32>
    %222 = arith.addf %197, %221 : vector<16x32xf32>
    %223 = vector.broadcast %161 : vector<1x32xf32> to vector<16x32xf32>
    %224 = arith.addf %222, %223 : vector<16x32xf32>
    %225 = arith.addf %149, %224 : vector<16x32xf32>
    %cst_64 = arith.constant dense<0.000000e+00> : vector<16xf32>
    %226 = vector.multi_reduction <add>, %225, %cst_64 [1] : vector<16x32xf32> to vector<16xf32>
    %227 = vector.shape_cast %226 : vector<16xf32> to vector<16x1xf32>
    %cst_65 = arith.constant 3.200000e+01 : f32
    %228 = vector.broadcast %cst_65 : f32 to vector<16x1xf32>
    %229 = arith.divf %227, %228 : vector<16x1xf32>
    %230 = vector.broadcast %229 : vector<16x1xf32> to vector<16x32xf32>
    %231 = arith.subf %225, %230 : vector<16x32xf32>
    %232 = arith.mulf %231, %231 : vector<16x32xf32>
    %cst_66 = arith.constant dense<0.000000e+00> : vector<16xf32>
    %233 = vector.multi_reduction <add>, %232, %cst_66 [1] : vector<16x32xf32> to vector<16xf32>
    %234 = vector.shape_cast %233 : vector<16xf32> to vector<16x1xf32>
    %cst_67 = arith.constant 3.200000e+01 : f32
    %235 = vector.broadcast %cst_67 : f32 to vector<16x1xf32>
    %236 = arith.divf %234, %235 : vector<16x1xf32>
    %237 = vector.broadcast %229 : vector<16x1xf32> to vector<16x32xf32>
    %238 = arith.subf %225, %237 : vector<16x32xf32>
    %cst_68 = arith.constant 9.99999996E-13 : f32
    %239 = vector.broadcast %cst_68 : f32 to vector<16x1xf32>
    %240 = arith.addf %236, %239 : vector<16x1xf32>
    %241 = math.rsqrt %240 : vector<16x1xf32>
    %242 = vector.broadcast %241 : vector<16x1xf32> to vector<16x32xf32>
    %243 = arith.mulf %238, %242 : vector<16x32xf32>
    %244 = vector.broadcast %162 : vector<1x32xf32> to vector<16x32xf32>
    %245 = arith.mulf %243, %244 : vector<16x32xf32>
    %246 = vector.broadcast %163 : vector<1x32xf32> to vector<16x32xf32>
    %247 = arith.addf %245, %246 : vector<16x32xf32>
    %cst_69 = arith.constant dense<0.000000e+00> : vector<16x64xf32>
    %248 = tpu.matmul %247, %156, %cst_69 {dimension_numbers = #tpu.dot_dimension_numbers<[1], [0], [0], [1], [0, 0, 1, 1], [], []>} : vector<16x32xf32>, vector<32x64xf32>, vector<16x64xf32> -> vector<16x64xf32>
    %249 = vector.broadcast %166 : vector<1x64xf32> to vector<16x64xf32>
    %250 = arith.addf %248, %249 : vector<16x64xf32>
    %251 = arith.mulf %250, %250 : vector<16x64xf32>
    %252 = arith.mulf %250, %251 : vector<16x64xf32>
    %cst_70 = arith.constant 4.471500e-02 : f32
    %253 = vector.broadcast %cst_70 : f32 to vector<16x64xf32>
    %254 = arith.mulf %253, %252 : vector<16x64xf32>
    %255 = arith.addf %250, %254 : vector<16x64xf32>
    %cst_71 = arith.constant 0.797884583 : f32
    %256 = vector.broadcast %cst_71 : f32 to vector<16x64xf32>
    %257 = arith.mulf %256, %255 : vector<16x64xf32>
    %258 = math.tanh %257 : vector<16x64xf32>
    %cst_72 = arith.constant 1.000000e+00 : f32
    %259 = vector.broadcast %cst_72 : f32 to vector<16x64xf32>
    %260 = arith.addf %259, %258 : vector<16x64xf32>
    %cst_73 = arith.constant 5.000000e-01 : f32
    %261 = vector.broadcast %cst_73 : f32 to vector<16x64xf32>
    %262 = arith.mulf %261, %260 : vector<16x64xf32>
    %263 = arith.mulf %250, %262 : vector<16x64xf32>
    %cst_74 = arith.constant dense<0.000000e+00> : vector<16x32xf32>
    %264 = tpu.matmul %263, %157, %cst_74 {dimension_numbers = #tpu.dot_dimension_numbers<[1], [1], [0], [0], [0, 0, 1, 0], [], []>} : vector<16x64xf32>, vector<32x64xf32>, vector<16x32xf32> -> vector<16x32xf32>
    %265 = vector.broadcast %167 : vector<1x32xf32> to vector<16x32xf32>
    %266 = arith.addf %264, %265 : vector<16x32xf32>
    %267 = arith.addf %247, %266 : vector<16x32xf32>
    %cst_75 = arith.constant dense<0.000000e+00> : vector<16xf32>
    %268 = vector.multi_reduction <add>, %267, %cst_75 [1] : vector<16x32xf32> to vector<16xf32>
    %269 = vector.shape_cast %268 : vector<16xf32> to vector<16x1xf32>
    %cst_76 = arith.constant 3.200000e+01 : f32
    %270 = vector.broadcast %cst_76 : f32 to vector<16x1xf32>
    %271 = arith.divf %269, %270 : vector<16x1xf32>
    %272 = vector.broadcast %271 : vector<16x1xf32> to vector<16x32xf32>
    %273 = arith.subf %267, %272 : vector<16x32xf32>
    %274 = arith.mulf %273, %273 : vector<16x32xf32>
    %cst_77 = arith.constant dense<0.000000e+00> : vector<16xf32>
    %275 = vector.multi_reduction <add>, %274, %cst_77 [1] : vector<16x32xf32> to vector<16xf32>
    %276 = vector.shape_cast %275 : vector<16xf32> to vector<16x1xf32>
    %cst_78 = arith.constant 3.200000e+01 : f32
    %277 = vector.broadcast %cst_78 : f32 to vector<16x1xf32>
    %278 = arith.divf %276, %277 : vector<16x1xf32>
    %279 = vector.broadcast %271 : vector<16x1xf32> to vector<16x32xf32>
    %280 = arith.subf %267, %279 : vector<16x32xf32>
    %cst_79 = arith.constant 9.99999996E-13 : f32
    %281 = vector.broadcast %cst_79 : f32 to vector<16x1xf32>
    %282 = arith.addf %278, %281 : vector<16x1xf32>
    %283 = math.rsqrt %282 : vector<16x1xf32>
    %284 = vector.broadcast %283 : vector<16x1xf32> to vector<16x32xf32>
    %285 = arith.mulf %280, %284 : vector<16x32xf32>
    %286 = vector.broadcast %164 : vector<1x32xf32> to vector<16x32xf32>
    %287 = arith.mulf %285, %286 : vector<16x32xf32>
    %288 = vector.broadcast %165 : vector<1x32xf32> to vector<16x32xf32>
    %289 = arith.addf %287, %288 : vector<16x32xf32>
    %290 = vector.shape_cast %289 : vector<16x32xf32> to vector<2x8x32xf32>
    %291 = vector.shape_cast %2 : vector<2x8xf32> to vector<2x1x8xf32>
    %cst_80 = arith.constant dense<0.000000e+00> : vector<2x1x32xf32>
    %292 = tpu.matmul %291, %290, %cst_80 {dimension_numbers = #tpu.dot_dimension_numbers<[2], [1], [1], [2], [0, 0, 0, 1, 1, 2], [0], [0]>} : vector<2x1x8xf32>, vector<2x8x32xf32>, vector<2x1x32xf32> -> vector<2x1x32xf32>
    %cst_81 = arith.constant dense<0.000000e+00> : vector<2xf32>
    %293 = vector.multi_reduction <add>, %2, %cst_81 [1] : vector<2x8xf32> to vector<2xf32>
    %294 = vector.shape_cast %293 : vector<2xf32> to vector<2x1xf32>
    %cst_82 = arith.constant 9.99999971E-10 : f32
    %295 = vector.broadcast %cst_82 : f32 to vector<2x1xf32>
    %296 = arith.maximumf %294, %295 : vector<2x1xf32>
    %297 = vector.shape_cast %292 : vector<2x1x32xf32> to vector<2x32xf32>
    %298 = vector.broadcast %296 : vector<2x1xf32> to vector<2x32xf32>
    %299 = arith.divf %297, %298 : vector<2x32xf32>
    %c0_83 = arith.constant 0 : index
    %c0_84 = arith.constant 0 : index
    %300 = vector.load %arg5[%c0_83, %c0_84] : memref<2x32xf32, #tpu.memory_space<vmem>>, vector<2x32xf32>
    tpu.vector_store %arg5[%c0_83, %c0_84], %299 {strides = array<i32>} : memref<2x32xf32, #tpu.memory_space<vmem>>, vector<2x32xf32>,
    return
  }
}

</mosaic_0001>

<bundles_post_ra>
// kernel: sentence_transformer_forward.1
= control target key start
LH: loop header
LB: loop body
LE: loop exit
PB: predicated region body
PF: predicated region fallthrough
CT: control target
= control target key end

     0   :  { %vm72_vm0 = vcmask 261120   ;;  %s3622_s0 = inlined_call_operand.vmem [shape: f32[2,8,32], index: 0, kind: input, shape index: {}]   ;;  %s3623_s1 = inlined_call_operand.vmem [shape: f32[2,8], index: 1, kind: input, shape index: {}]   ;;  %s3624_s2 = inlined_call_operand.vmem [shape: f32[2,32,128], index: 2, kind: input, shape index: {}]   ;;  %s3625_s3 = inlined_call_operand.vmem [shape: f32[2,32,128], index: 3, kind: input, shape index: {}]   ;;  %s3626_s4 = inlined_call_operand.vmem [shape: f32[2,8,128], index: 4, kind: input, shape index: {}]   ;;  %s3627_s5 = inlined_call_operand.hbm [shape: f32[2,32], index: 5, kind: output, shape index: {}]  }
   0x1   :  { %v3200_v0 = vld [vmem:[%s3624_s2 + $0x18] sm:$0xff]  ;;  %v3205_v1 = vld [vmem:[%s3624_s2 + $0x10] sm:$0xff]  ;;  %v3211_v2 = vld [vmem:[%s3622_s0] sm:$0xff] }
   0x2   :  { %2880 = vmatprep.subr.mxu0 %v3200_v0  ;;  %v3217_v3 = vld [vmem:[%s3624_s2 + $0x8] sm:$0xff]  ;;  %2888 = vmatprep.mubr.msk.f32.mxu0 %vm72_vm0, %v3211_v2 }
   0x3   :  { %2881 = vmatpush3.msra.mxu0 %v3200_v0 }
   0x4   :  { %10 = vsyncpa [#allocation3], 0  ;;  %2882 = vmatprep.subr.mxu0 %v3205_v1  ;;  %v3226_v4 = vld [vmem:[%s3624_s2] sm:$0xff]  ;;  %v3233_v5 = vld [vmem:[%s3622_s0 + $0x8] sm:$0xff]  ;;  %v3157_v6 = vmov 0.0   ;;  %v30_v7 = vlaneseq  ;;  %vm3158_vm1 = vmmov 0  }
   0x5   :  { %2883 = vmatpush3.msra.mxu0 %v3205_v1  ;;  %2891 = vmatprep.subr.mxu1 %v3157_v6  ;;  %v3253_v10 = vld [vmem:[%s3626_s4] sm:$0xff]  ;;  %s3159_s6 = smov 96   ;;  %vm157_vm2 = vcmask 130048   ;;  %v3160_v18 = vmov 1966171168   ;;  %vm313_vm3 = vcmask 64512  }
   0x6   :  { %2884 = vmatprep.subr.mxu0 %v3217_v3  ;;  %v3241_v8 = vshrl.u32 %v30_v7, 7  ;;  %2893 = vmatprep.mubr.msk.f32.mxu1 %vm3158_vm1, %v3157_v6  ;;  %v28_v19 = vunpack.c.l.s4 %v3160_v18  ;;  %v23_v20 = vld [vmem:[%s3623_s1] sm:$0x3]  ;;  %s3161_s9 = smov 64   ;;  %s3162_s10 = smov 80   ;;  %vm1166_vm4 = vcmask 523264  }
   0x7   :  { %2885 = vmatpush3.msra.mxu0 %v3217_v3  ;;  %v24_v22 = vsub.f32 1.0, %v23_v20  ;;  %s3163_s11 = smov 112   ;;  %s3164_s12 = smov 48   ;;  %vm2694_vm5 = vcmask 58368   ;;  %vm2710_vm6 = vcmask 1041409   ;;  %vm2713_vm7 = vcmask 254976  }
   0x8   :  { %2886 = vmatprep.subr.mxu0 %v3226_v4  ;;  %v3248_v9 = vsub.s32 0, %v3241_v8  ;;  %v29_v21 = vunpack.c.0.s8 %v28_v19  ;;  %s3165_s13 = smov 32  }
   0x9   :  { %2887 = vmatpush3.msra.mxu0 %v3226_v4  ;;  %v25_v24 = vmul.f32 -1e+09, %v24_v22 }
   0xa   :  { %2889 = vmatmul.mubr.msk.f32.vlgmr.msra.gmra.mxu0 %vm72_vm0, %v3233_v5  ;;  %2901 = vmatprep.subr.mxu0 %v3157_v6  ;;  %v3257_v12 = vrot.slane %v3253_v10, %v3248_v9  ;;  %v3285_v23 = vsub.s32 %v29_v21, %v3241_v8 }
   0xb   :  { %2903 = vmatprep.mubr.msk.f32.mxu0 %vm3158_vm1, %v3157_v6 }
   0xc   :  { %v33_v25 = vrot.slane %v25_v24, %v3285_v23 }
   0xe   :  { %v41_v26 = vrot.slane %v33_v25, %v3285_v23  ;;  %v34_v27 = vcombine.high %v33_v25, %v33_v25 }
  0x10   :  { %v3290_v28 = vrot.slane %v41_v26, %v3248_v9  ;;  %v48_v29 = vrot.slane %v34_v27, %v3285_v23 }
  0x12   :  { %v3295_v34 = vrot.slane %v48_v29, %v3248_v9 }
  0xca   :  { %v2890_v11 = vpop.f32.mrf.mxu0 }
  0xcb   :  { %v3265_v15 = vadd.f32 %v2890_v11, %v3257_v12 }
  0xcc   :  { %v145_v13 = vpop.f32.mrf.mxu0 }
  0xcd   :  { %v3260_v14 = vadd.f32 %v145_v13, %v3257_v12 }
  0xcf   :  { %155 = vrot.lane.b32.xlu0 %v3260_v14, %s3159_s6 }
  0xd3   :  { %233 = vrot.lane.b32.xlu0 %v3265_v15, %s3159_s6 }
 0x141   :  { %v156_v16 = vpop.permute.xlu0 %155 }
 0x142   :  { %2892 = vmatpush3.xpose.msk.msra.mxu1 %vm157_vm2, %v156_v16 }
 0x143   :  { %2896 = vmatprep.subr.mxu1 %v3157_v6 }
 0x145   :  { %2894 = vmatmul.mubr.msk.f32.vlgmr.msra.gmra.mxu1 %vm157_vm2, %v3260_v14  ;;  %v234_v17 = vpop.permute.xlu0 %233 }
 0x146   :  { %2897 = vmatpush3.xpose.msk.msra.mxu1 %vm157_vm2, %v234_v17  ;;  %2898 = vmatprep.mubr.msk.f32.mxu1 %vm3158_vm1, %v3157_v6 }
 0x147   :  { %2906 = vmatprep.subr.mxu1 %v3157_v6 }
 0x149   :  { %2899 = vmatmul.mubr.msk.f32.vlgmr.msra.gmra.mxu1 %vm157_vm2, %v3265_v15 }
 0x14a   :  { %2908 = vmatprep.mubr.msk.f32.mxu1 %vm3158_vm1, %v3157_v6 }
 0x205   :  { %v228_v30 = vpop.f32.mrf.mxu1 }
 0x206   :  { %v309_v31 = vmul.f32 0.25, %v228_v30 }
 0x207   :  { %v2895_v32 = vpop.f32.mrf.mxu1 }
 0x208   :  { %v311_v33 = vadd.f32 %v309_v31, %v3290_v28 }
 0x209   :  { %v305_v35 = vpop.f32.mrf.mxu1 }
 0x20a   :  { %v310_v36 = vmul.f32 0.25, %v305_v35  ;;  %v314_v37 = vsel %vm313_vm3, %v311_v33, -inf }
 0x20b   :  { %315 = vmax.xlane.f32.xlu1 %v314_v37  ;;  %v2900_v38 = vpop.f32.mrf.mxu1 }
 0x20c   :  { %v312_v39 = vadd.f32 %v310_v36, %v3295_v34 }
 0x20e   :  { %v317_v40 = vsel %vm313_vm3, %v312_v39, -inf }
 0x20f   :  { %318 = vmax.xlane.f32.xlu1 %v317_v40 }
 0x220   :  { %336 = vrot.lane.b32.xlu1 %v3260_v14, %s3161_s9 }
 0x224   :  { %412 = vrot.lane.b32.xlu1 %v3265_v15, %s3161_s9 }
 0x228   :  { %490 = vrot.lane.b32.xlu1 %v3260_v14, %s3162_s10 }
 0x22c   :  { %568 = vrot.lane.b32.xlu1 %v3265_v15, %s3162_s10 }
 0x294   :  { %v316_v41 = vpop.xlane.xlu1 %315 }
 0x295   :  { %v320_v42 = vsub.f32 %v311_v33, %v316_v41 }
 0x297   :  { %v322_v43 = vmul.f32 1.442695, %v320_v42 }
 0x298   :  { %v319_v44 = vpop.xlane.xlu1 %318 }
 0x299   :  { %3074 = vpow2.f32 %v322_v43  ;;  %v321_v45 = vsub.f32 %v312_v39, %v319_v44 }
 0x29b   :  { %v324_v46 = vmul.f32 1.442695, %v321_v45 }
 0x29c   :  { %v337_v47 = vpop.permute.xlu1 %336 }
 0x29d   :  { %3076 = vpow2.f32 %v324_v46  ;;  %2902 = vmatpush3.msra.mxu0 %v337_v47 }
 0x29e   :  { %2911 = vmatprep.subr.mxu0 %v3157_v6 }
 0x2a0   :  { %v413_v48 = vpop.permute.xlu1 %412 }
 0x2a1   :  { %2907 = vmatpush3.msra.mxu1 %v413_v48 }
 0x2a2   :  { %2916 = vmatprep.subr.mxu1 %v3157_v6 }
 0x2a4   :  { %v491_v53 = vpop.permute.xlu1 %490 }
 0x2a6   :  { %v3075_v49 = vpop.eup %3074 }
 0x2a7   :  { %v326_v50 = vsel %vm313_vm3, %v3075_v49, 0.0 }
 0x2a8   :  { %327 = vadd.xlane.f32.xlu0 %v326_v50  ;;  %v569_v54 = vpop.permute.xlu1 %568 }
 0x2aa   :  { %v3077_v51 = vpop.eup %3076 }
 0x2ab   :  { %v329_v52 = vsel %vm313_vm3, %v3077_v51, 0.0 }
 0x2ac   :  { %330 = vadd.xlane.f32.xlu1 %v329_v52 }
 0x2bd   :  { %566 = vrot.lane.b32.xlu1 %v3265_v15, %s3163_s11 }
 0x2be   :  { %488 = vrot.lane.b32.xlu0 %v3260_v14, %s3163_s11 }
 0x331   :  { %v328_v55 = vpop.xlane.xlu0 %327 }
 0x332   :  { %3078 = vrcp.f32 %v328_v55 }
 0x335   :  { %v331_v56 = vpop.xlane.xlu1 %330  ;;  %v489_v61 = vpop.permute.xlu0 %488 }
 0x336   :  { %3080 = vrcp.f32 %v331_v56 }
 0x339   :  { %v567_v62 = vpop.permute.xlu1 %566 }
 0x33f   :  { %v3079_v57 = vpop.eup %3078 }
 0x340   :  { %v334_v58 = vmul.f32 %v3079_v57, %v3075_v49 }
 0x342   :  { %2904 = vmatmul.mubr.msk.f32.vlgmr.msra.gmra.mxu0 %vm313_vm3, %v334_v58 }
 0x343   :  { %v3081_v59 = vpop.eup %3080  ;;  %2912 = vmatpush3.xpose.msk.msra.mxu0 %vm157_vm2, %v491_v53  ;;  %2913 = vmatprep.mubr.msk.f32.mxu0 %vm3158_vm1, %v3157_v6 }
 0x344   :  { %v335_v60 = vmul.f32 %v3081_v59, %v3077_v51  ;;  %2921 = vmatprep.subr.mxu0 %v3157_v6 }
 0x346   :  { %2909 = vmatmul.mubr.msk.f32.vlgmr.msra.gmra.mxu1 %vm313_vm3, %v335_v60  ;;  %2914 = vmatmul.mubr.msk.f32.vlgmr.msra.gmra.mxu0 %vm157_vm2, %v489_v61 }
 0x347   :  { %2917 = vmatpush3.xpose.msk.msra.mxu1 %vm157_vm2, %v569_v54  ;;  %2918 = vmatprep.mubr.msk.f32.mxu1 %vm3158_vm1, %v3157_v6 }
 0x348   :  { %2926 = vmatprep.subr.mxu1 %v3157_v6  ;;  %2923 = vmatprep.mubr.msk.f32.mxu0 %vm3158_vm1, %v3157_v6 }
 0x34a   :  { %2919 = vmatmul.mubr.msk.f32.vlgmr.msra.gmra.mxu1 %vm157_vm2, %v567_v62 }
 0x34b   :  { %2928 = vmatprep.mubr.msk.f32.mxu1 %vm3158_vm1, %v3157_v6 }
 0x402   :  { %v408_v63 = vpop.f32.mrf.mxu0 }
 0x404   :  { %v2905_v7 = vpop.f32.mrf.mxu0 }
 0x406   :  { %v484_v11 = vpop.f32.mrf.mxu1  ;;  %v562_v13 = vpop.f32.mrf.mxu0 }
 0x407   :  { %v644_v16 = vmul.f32 0.25, %v562_v13 }
 0x408   :  { %v2910_v17 = vpop.f32.mrf.mxu1  ;;  %v2915_v18 = vpop.f32.mrf.mxu0 }
 0x409   :  { %v646_v19 = vadd.f32 %v644_v16, %v3290_v28 }
 0x40a   :  { %v640_v20 = vpop.f32.mrf.mxu1 }
 0x40b   :  { %v645_v21 = vmul.f32 0.25, %v640_v20  ;;  %v648_v22 = vsel %vm313_vm3, %v646_v19, -inf  ;;  %v65_v20 = vld [vmem:[%s3625_s3 + $0x10] sm:$0xff] }
 0x40c   :  { %v2920_v24 = vpop.f32.mrf.mxu1  ;;  %649 = vmax.xlane.f32.xlu1 %v648_v22  ;;  %v64_v22 = vld [vmem:[%s3625_s3 + $0x8] sm:$0xff] }
 0x40d   :  { %v647_v25 = vadd.f32 %v645_v21, %v3295_v34  ;;  %v63_v24 = vld [vmem:[%s3625_s3] sm:$0xff] }
 0x40f   :  { %v651_v26 = vsel %vm313_vm3, %v647_v25, -inf }
 0x410   :  { %652 = vmax.xlane.f32.xlu0 %v651_v26 }
 0x426   :  { %746 = vrot.lane.b32.xlu0 %v3265_v15, %s3164_s12 }
 0x42a   :  { %824 = vrot.lane.b32.xlu0 %v3205_v1, %s3165_s13 }
 0x42e   :  { %1001 = vrot.lane.b32.xlu0 %v3257_v12, %s3165_s13 }
 0x495   :  { %v650_v27 = vpop.xlane.xlu1 %649 }
 0x496   :  { %v654_v29 = vsub.f32 %v646_v19, %v650_v27  ;;  %v66_v19 = vld [vmem:[%s3625_s3 + $0x18] sm:$0xff] }
 0x498   :  { %v656_v30 = vmul.f32 1.442695, %v654_v29 }
 0x499   :  { %v653_v31 = vpop.xlane.xlu0 %652 }
 0x49a   :  { %3082 = vpow2.f32 %v656_v30  ;;  %v655_v32 = vsub.f32 %v647_v25, %v653_v31  ;;  %v1049_v25 = vsub.s32 2, %v3241_v8 }
 0x49c   :  { %v658_v33 = vmul.f32 1.442695, %v655_v32  ;;  %v1050_v26 = vrot.slane %v3253_v10, %v1049_v25 }
 0x49d   :  { %v747_v35 = vpop.permute.xlu0 %746 }
 0x49e   :  { %3084 = vpow2.f32 %v658_v33  ;;  %2927 = vmatpush3.msra.mxu1 %v747_v35 }
 0x4a7   :  { %v3083_v36 = vpop.eup %3082 }
 0x4a8   :  { %v660_v15 = vsel %vm313_vm3, %v3083_v36, 0.0 }
 0x4a9   :  { %661 = vadd.xlane.f32.xlu1 %v660_v15 }
 0x4ab   :  { %v3085_v37 = vpop.eup %3084 }
 0x4ac   :  { %v663_v1 = vsel %vm313_vm3, %v3085_v37, 0.0 }
 0x4ad   :  { %664 = vadd.xlane.f32.xlu1 %v663_v1 }
 0x4be   :  { %670 = vrot.lane.b32.xlu1 %v3260_v14, %s3164_s12 }
 0x4c2   :  { %826 = vrot.lane.b32.xlu1 %v3200_v0, %s3165_s13 }
 0x4c6   :  { %915 = vrot.lane.b32.xlu1 %v3217_v3, %s3165_s13 }
 0x4ca   :  { %913 = vrot.lane.b32.xlu1 %v3226_v4, %s3165_s13  ;;  %v825_v4 = vpop.permute.xlu0 %824 }
 0x4ce   :  { %v1002_v50 = vpop.permute.xlu0 %1001 }
 0x532   :  { %v662_v12 = vpop.xlane.xlu1 %661 }
 0x533   :  { %3086 = vrcp.f32 %v662_v12 }
 0x536   :  { %v665_v38 = vpop.xlane.xlu1 %664 }
 0x537   :  { %3088 = vrcp.f32 %v665_v38 }
 0x53a   :  { %v671_v39 = vpop.permute.xlu1 %670 }
 0x53b   :  { %2922 = vmatpush3.msra.mxu0 %v671_v39 }
 0x53e   :  { %v827_v40 = vpop.permute.xlu1 %826 }
 0x53f   :  { %2931 = vmatprep.subr.mxu0 %v827_v40 }
 0x540   :  { %v3087_v41 = vpop.eup %3086 }
 0x541   :  { %v668_v42 = vmul.f32 %v3087_v41, %v3083_v36 }
 0x542   :  { %v916_v14 = vpop.permute.xlu1 %915 }
 0x543   :  { %2924 = vmatmul.mubr.msk.f32.vlgmr.msra.gmra.mxu0 %vm313_vm3, %v668_v42  ;;  %2938 = vmatprep.subr.mxu1 %v916_v14 }
 0x544   :  { %v3089_v0 = vpop.eup %3088  ;;  %2932 = vmatpush3.msra.mxu0 %v827_v40 }
 0x545   :  { %v669_v3 = vmul.f32 %v3089_v0, %v3085_v37  ;;  %2933 = vmatprep.subr.mxu0 %v825_v4 }
 0x546   :  { %v914_v43 = vpop.permute.xlu1 %913  ;;  %2934 = vmatpush3.msra.mxu0 %v825_v4 }
 0x547   :  { %2929 = vmatmul.mubr.msk.f32.vlgmr.msra.gmra.mxu1 %vm313_vm3, %v669_v3  ;;  %2945 = vmatprep.subr.mxu0 %v66_v19 }
 0x548   :  { %2939 = vmatpush3.msra.mxu1 %v916_v14  ;;  %2942 = vmatprep.mubr.msk.f32.mxu1 %vm157_vm2, %v408_v63 }
 0x549   :  { %2940 = vmatprep.subr.mxu1 %v914_v43 }
 0x54a   :  { %2941 = vmatpush3.msra.mxu1 %v914_v43 }
 0x54b   :  { %2943 = vmatmul.mubr.msk.f32.vlgmr.msra.gmra.mxu1 %vm157_vm2, %v484_v11 }
 0x603   :  { %v742_v44 = vpop.f32.mrf.mxu0 }
 0x604   :  { %2935 = vmatprep.mubr.msk.f32.mxu0 %vm157_vm2, %v742_v44 }
 0x605   :  { %v2925_v45 = vpop.f32.mrf.mxu0 }
 0x607   :  { %v818_v46 = vpop.f32.mrf.mxu1 }
 0x608   :  { %2936 = vmatmul.mubr.msk.f32.vlgmr.msra.gmra.mxu0 %vm157_vm2, %v818_v46 }
 0x609   :  { %v2930_v47 = vpop.f32.mrf.mxu1  ;;  %2946 = vmatpush3.msra.mxu0 %v66_v19 }
 0x60a   :  { %2947 = vmatprep.subr.mxu0 %v65_v20 }
 0x60b   :  { %v2944_v48 = vpop.f32.mrf.mxu1  ;;  %2948 = vmatpush3.msra.mxu0 %v65_v20 }
 0x60c   :  { %2949 = vmatprep.subr.mxu0 %v64_v22 }
 0x60d   :  { %v991_v52 = vpop.f32.mrf.mxu1  ;;  %2950 = vmatpush3.msra.mxu0 %v64_v22 }
 0x60e   :  { %2951 = vmatprep.subr.mxu0 %v63_v24 }
 0x60f   :  { %2952 = vmatpush3.msra.mxu0 %v63_v24 }
 0x6c8   :  { %v2937_v49 = vpop.f32.mrf.mxu0 }
 0x6c9   :  { %v997_v51 = vadd.f32 %v2944_v48, %v2937_v49 }
 0x6ca   :  { %v902_v53 = vpop.f32.mrf.mxu0 }
 0x6cb   :  { %v992_v54 = vadd.f32 %v991_v52, %v902_v53  ;;  %v1005_v55 = vadd.f32 %v1002_v50, %v997_v51 }
 0x6cd   :  { %v1004_v56 = vadd.f32 %v1002_v50, %v992_v54  ;;  %v1007_v57 = vadd.f32 %v1005_v55, %v3233_v5 }
 0x6cf   :  { %v1011_v58 = vsel %vm72_vm0, %v1007_v57, 0.0  ;;  %v1006_v59 = vadd.f32 %v1004_v56, %v3211_v2  ;;  %v1037_v2 = vsub.s32 1, %v3241_v8 }
 0x6d0   :  { %1012 = vadd.xlane.f32.xlu0 %v1011_v58 }
 0x6d1   :  { %v1008_v60 = vsel %vm72_vm0, %v1006_v59, 0.0  ;;  %v3375_v21 = vrot.slane %v3253_v10, %v1037_v2 }
 0x6d2   :  { %1009 = vadd.xlane.f32.xlu1 %v1008_v60 }
 0x759   :  { %v1013_v61 = vpop.xlane.xlu0 %1012 }
 0x75a   :  { %v1016_v62 = vmul.f32 0.03125, %v1013_v61 }
 0x75b   :  { %v1010_v63 = vpop.xlane.xlu1 %1009 }
 0x75c   :  { %v1018_v7 = vsub.f32 %v1007_v57, %v1016_v62  ;;  %v1015_v11 = vmul.f32 0.03125, %v1010_v63 }
 0x75e   :  { %v1017_v13 = vsub.f32 %v1006_v59, %v1015_v11  ;;  %v1020_v16 = vmul.f32 %v1018_v7, %v1018_v7 }
 0x760   :  { %v1024_v17 = vsel %vm72_vm0, %v1020_v16, 0.0  ;;  %v1019_v18 = vmul.f32 %v1017_v13, %v1017_v13 }
 0x761   :  { %1025 = vadd.xlane.f32.xlu1 %v1024_v17 }
 0x762   :  { %v1021_v5 = vsel %vm72_vm0, %v1019_v18, 0.0 }
 0x763   :  { %1022 = vadd.xlane.f32.xlu0 %v1021_v5 }
 0x772   :  { %1160 = vrot.lane.b32.xlu1 %v66_v19, %s3161_s9 }
 0x776   :  { %1158 = vrot.lane.b32.xlu1 %v65_v20, %s3161_s9 }
 0x779   :  { %1042 = vrot.lane.b32.xlu0 %v3375_v21, %s3159_s6 }
 0x77a   :  { %1154 = vrot.lane.b32.xlu1 %v63_v24, %s3161_s9 }
 0x77d   :  { %1156 = vrot.lane.b32.xlu0 %v64_v22, %s3161_s9 }
 0x781   :  { %1163 = vrot.lane.b32.xlu0 %v1050_v26, %s3161_s9 }
 0x7ea   :  { %v1026_v27 = vpop.xlane.xlu1 %1025 }
 0x7eb   :  { %v1028_v29 = vmul.f32 0.03125, %v1026_v27 }
 0x7ec   :  { %v1023_v30 = vpop.xlane.xlu0 %1022 }
 0x7ed   :  { %v1030_v31 = vadd.f32 1e-12, %v1028_v29  ;;  %v1027_v32 = vmul.f32 0.03125, %v1023_v30 }
 0x7ee   :  { %v1161_v40 = vpop.permute.xlu1 %1160 }
 0x7ef   :  { %3090 = vrsqrt.f32 %v1030_v31  ;;  %v1029_v33 = vadd.f32 1e-12, %v1027_v32  ;;  %2956 = vmatprep.subr.msk.mxu1 %vm1166_vm4, %v1161_v40 }
 0x7f0   :  { %v1043_v38 = vpop.permute.xlu0 %1042  ;;  %2957 = vmatpush3.xpose.msk.msra.mxu1 %vm1166_vm4, %v1161_v40 }
 0x7f1   :  { %3092 = vrsqrt.f32 %v1029_v33  ;;  %v3417_v33 = vld [vmem:[%s3624_s2 + $0x38] sm:$0xff] }
 0x7f2   :  { %v1159_v41 = vpop.permute.xlu1 %1158  ;;  %2967 = vmatprep.subr.mxu0 %v3417_v33 }
 0x7f3   :  { %2958 = vmatprep.subr.msk.mxu1 %vm1166_vm4, %v1159_v41 }
 0x7f4   :  { %2959 = vmatpush3.xpose.msk.msra.mxu1 %vm1166_vm4, %v1159_v41  ;;  %v1157_v42 = vpop.permute.xlu0 %1156 }
 0x7f5   :  { %2960 = vmatprep.subr.msk.mxu1 %vm1166_vm4, %v1157_v42 }
 0x7f6   :  { %v1155_v14 = vpop.permute.xlu1 %1154 }
 0x7f8   :  { %2961 = vmatpush3.xpose.msk.msra.mxu1 %vm1166_vm4, %v1157_v42  ;;  %v1164_v62 = vpop.permute.xlu0 %1163 }
 0x7f9   :  { %2962 = vmatprep.subr.msk.mxu1 %vm1166_vm4, %v1155_v14 }
 0x7fc   :  { %v3091_v35 = vpop.eup %3090  ;;  %2963 = vmatpush3.xpose.msk.msra.mxu1 %vm1166_vm4, %v1155_v14 }
 0x7fd   :  { %v1034_v36 = vmul.f32 %v3091_v35, %v1018_v7  ;;  %2983 = vmatprep.subr.mxu1 %v3157_v6  ;;  %v3428_v35 = vld [vmem:[%s3624_s2 + $0x30] sm:$0xff] }
 0x7fe   :  { %v3093_v15 = vpop.eup %3092 }
 0x7ff   :  { %v1033_v37 = vmul.f32 %v3093_v15, %v1017_v13  ;;  %v1040_v1 = vmul.f32 %v3375_v21, %v1034_v36  ;;  %v3435_v36 = vld [vmem:[%s3624_s2 + $0x28] sm:$0xff] }
 0x801   :  { %v1039_v12 = vmul.f32 %v3375_v21, %v1033_v37  ;;  %v1046_v39 = vadd.f32 %v1043_v38, %v1040_v1 }
 0x803   :  { %v1045_v10 = vadd.f32 %v1043_v38, %v1039_v12 }
 0x805   :  { %2953 = vmatprep.mubr.msk.f32.mxu0 %vm72_vm0, %v1045_v10 }
 0x806   :  { %2954 = vmatmul.mubr.msk.f32.vlgmr.msra.gmra.mxu0 %vm72_vm0, %v1046_v39 }
 0x807   :  { %2968 = vmatpush3.msra.mxu0 %v3417_v33 }
 0x808   :  { %2969 = vmatprep.subr.mxu0 %v3428_v35 }
 0x809   :  { %2970 = vmatpush3.msra.mxu0 %v3428_v35 }
 0x80a   :  { %2971 = vmatprep.subr.mxu0 %v3435_v36 }
 0x80b   :  { %2972 = vmatpush3.msra.mxu0 %v3435_v36 }
 0x8c6   :  { %v2955_v0 = vpop.f32.mrf.mxu0 }
 0x8c7   :  { %v1129_v3 = vadd.f32 %v2955_v0, %v1050_v26 }
 0x8c8   :  { %v1123_v43 = vpop.f32.mrf.mxu0 }
 0x8c9   :  { %v1133_v4 = vmul.f32 %v1129_v3, %v1129_v3  ;;  %v1124_v44 = vadd.f32 %v1123_v43, %v1050_v26 }
 0x8cb   :  { %v1135_v45 = vmul.f32 %v1133_v4, %v1129_v3  ;;  %v1132_v46 = vmul.f32 %v1124_v44, %v1124_v44 }
 0x8cd   :  { %v1137_v47 = vmul.f32 0.044715, %v1135_v45  ;;  %v1134_v48 = vmul.f32 %v1132_v46, %v1124_v44  ;;  %v3460_v45 = vld [vmem:[%s3626_s4 + $0x8] sm:$0xff] }
 0x8ce   :  { %v3464_v46 = vrot.slane %v3460_v45, %v3248_v9 }
 0x8cf   :  { %v1139_v49 = vadd.f32 %v1137_v47, %v1129_v3  ;;  %v1136_v50 = vmul.f32 0.044715, %v1134_v48 }
 0x8d1   :  { %v1141_v51 = vmul.f32 0.7978846, %v1139_v49  ;;  %v1138_v52 = vadd.f32 %v1136_v50, %v1124_v44 }
 0x8d3   :  { %3094 = vtanh.f32 %v1141_v51  ;;  %v1140_v53 = vmul.f32 0.7978846, %v1138_v52 }
 0x8d5   :  { %3096 = vtanh.f32 %v1140_v53 }
 0x8e0   :  { %v3095_v54 = vpop.eup %3094 }
 0x8e1   :  { %v1145_v55 = vadd.f32 1.0, %v3095_v54 }
 0x8e2   :  { %v3097_v56 = vpop.eup %3096 }
 0x8e3   :  { %v1144_v57 = vadd.f32 1.0, %v3097_v56  ;;  %v1147_v58 = vmul.f32 0.5, %v1145_v55 }
 0x8e5   :  { %v1146_v59 = vmul.f32 0.5, %v1144_v57  ;;  %v1149_v61 = vmul.f32 %v1147_v58, %v1129_v3 }
 0x8e7   :  { %v1148_v60 = vmul.f32 %v1146_v59, %v1124_v44 }
 0x8e9   :  { %2964 = vmatprep.mubr.msk.f32.mxu1 %vm1166_vm4, %v1148_v60 }
 0x8ea   :  { %2965 = vmatmul.mubr.msk.f32.vlgmr.msra.gmra.mxu1 %vm1166_vm4, %v1149_v61 }
 0x8eb   :  { %2985 = vmatprep.mubr.msk.f32.mxu1 %vm3158_vm1, %v3157_v6 }
 0x9aa   :  { %v2966_v63 = vpop.f32.mrf.mxu1 }
 0x9ab   :  { %v1253_v7 = vadd.f32 %v2966_v63, %v1164_v62 }
 0x9ac   :  { %v1247_v11 = vpop.f32.mrf.mxu1 }
 0x9ad   :  { %v1248_v13 = vadd.f32 %v1247_v11, %v1164_v62  ;;  %v1257_v16 = vadd.f32 %v1253_v7, %v1046_v39 }
 0x9af   :  { %v1261_v17 = vsel %vm72_vm0, %v1257_v16, 0.0  ;;  %v1256_v18 = vadd.f32 %v1248_v13, %v1045_v10 }
 0x9b0   :  { %1262 = vadd.xlane.f32.xlu0 %v1261_v17 }
 0x9b1   :  { %v1258_v5 = vsel %vm72_vm0, %v1256_v18, 0.0 }
 0x9b2   :  { %1259 = vadd.xlane.f32.xlu1 %v1258_v5 }
 0xa39   :  { %v1263_v19 = vpop.xlane.xlu0 %1262 }
 0xa3a   :  { %v1265_v20 = vmul.f32 0.03125, %v1263_v19 }
 0xa3b   :  { %v1260_v22 = vpop.xlane.xlu1 %1259 }
 0xa3c   :  { %v1267_v24 = vsub.f32 %v1257_v16, %v1265_v20  ;;  %v1264_v26 = vmul.f32 0.03125, %v1260_v22 }
 0xa3e   :  { %v1266_v27 = vsub.f32 %v1256_v18, %v1264_v26  ;;  %v1269_v29 = vmul.f32 %v1267_v24, %v1267_v24 }
 0xa40   :  { %v1273_v30 = vsel %vm72_vm0, %v1269_v29, 0.0  ;;  %v1268_v31 = vmul.f32 %v1266_v27, %v1266_v27 }
 0xa41   :  { %1274 = vadd.xlane.f32.xlu1 %v1273_v30 }
 0xa42   :  { %v1270_v32 = vsel %vm72_vm0, %v1268_v31, 0.0 }
 0xa43   :  { %1271 = vadd.xlane.f32.xlu0 %v1270_v32 }
 0xa52   :  { %1289 = vrot.lane.b32.xlu1 %v3375_v21, %s3165_s13 }
 0xa59   :  { %1284 = vrot.lane.b32.xlu0 %v3375_v21, %s3161_s9  ;;  %v3441_v21 = vld [vmem:[%s3624_s2 + $0x20] sm:$0xff] }
 0xa5a   :  { %2973 = vmatprep.subr.mxu0 %v3441_v21 }
 0xa5b   :  { %2974 = vmatpush3.msra.mxu0 %v3441_v21 }
 0xa5c   :  { %2978 = vmatprep.subr.mxu0 %v3157_v6 }
 0xaca   :  { %v1275_v15 = vpop.xlane.xlu1 %1274 }
 0xacb   :  { %v1277_v37 = vmul.f32 0.03125, %v1275_v15 }
 0xacc   :  { %v1272_v1 = vpop.xlane.xlu0 %1271 }
 0xacd   :  { %v1279_v12 = vadd.f32 1e-12, %v1277_v37  ;;  %v1276_v38 = vmul.f32 0.03125, %v1272_v1 }
 0xace   :  { %v1290_v43 = vpop.permute.xlu1 %1289 }
 0xacf   :  { %3098 = vrsqrt.f32 %v1279_v12  ;;  %v1278_v10 = vadd.f32 1e-12, %v1276_v38 }
 0xad0   :  { %v1285_v40 = vpop.permute.xlu0 %1284 }
 0xad1   :  { %3100 = vrsqrt.f32 %v1278_v10 }
 0xadc   :  { %v3099_v39 = vpop.eup %3098 }
 0xadd   :  { %v1283_v41 = vmul.f32 %v3099_v39, %v1267_v24 }
 0xade   :  { %v3101_v42 = vpop.eup %3100 }
 0xadf   :  { %v1282_v14 = vmul.f32 %v3101_v42, %v1266_v27  ;;  %v1288_v0 = vmul.f32 %v1285_v40, %v1283_v41 }
 0xae1   :  { %v1287_v3 = vmul.f32 %v1285_v40, %v1282_v14  ;;  %v3449_v44 = vadd.f32 %v1290_v43, %v1288_v0 }
 0xae3   :  { %v3447_v4 = vadd.f32 %v1290_v43, %v1287_v3 }
 0xae5   :  { %2975 = vmatprep.mubr.msk.f32.mxu0 %vm72_vm0, %v3447_v4 }
 0xae6   :  { %2976 = vmatmul.mubr.msk.f32.vlgmr.msra.gmra.mxu0 %vm72_vm0, %v3449_v44 }
 0xae7   :  { %2980 = vmatprep.mubr.msk.f32.mxu0 %vm3158_vm1, %v3157_v6 }
 0xba6   :  { %v2977_v47 = vpop.f32.mrf.mxu0 }
 0xba7   :  { %v3467_v48 = vadd.f32 %v2977_v47, %v3464_v46 }
 0xba8   :  { %v1382_v49 = vpop.f32.mrf.mxu0 }
 0xba9   :  { %v3470_v50 = vadd.f32 %v1382_v49, %v3464_v46  ;;  %1469 = vrot.lane.b32.xlu0 %v3467_v48, %s3159_s6 }
 0xbab   :  { %1392 = vrot.lane.b32.xlu1 %v3470_v50, %s3159_s6 }
 0xc1b   :  { %v1470_v51 = vpop.permute.xlu0 %1469 }
 0xc1c   :  { %2984 = vmatpush3.xpose.msk.msra.mxu1 %vm157_vm2, %v1470_v51 }
 0xc1d   :  { %v1393_v52 = vpop.permute.xlu1 %1392  ;;  %2993 = vmatprep.subr.mxu1 %v3157_v6 }
 0xc1e   :  { %2979 = vmatpush3.xpose.msk.msra.mxu0 %vm157_vm2, %v1393_v52 }
 0xc1f   :  { %2986 = vmatmul.mubr.msk.f32.vlgmr.msra.gmra.mxu1 %vm157_vm2, %v3467_v48  ;;  %2988 = vmatprep.subr.mxu0 %v3157_v6 }
 0xc20   :  { %2995 = vmatprep.mubr.msk.f32.mxu1 %vm3158_vm1, %v3157_v6 }
 0xc21   :  { %2981 = vmatmul.mubr.msk.f32.vlgmr.msra.gmra.mxu0 %vm157_vm2, %v3470_v50 }
 0xc22   :  { %2990 = vmatprep.mubr.msk.f32.mxu0 %vm3158_vm1, %v3157_v6 }
 0xcdf   :  { %v1541_v9 = vpop.f32.mrf.mxu1 }
 0xce0   :  { %v1546_v53 = vmul.f32 0.25, %v1541_v9 }
 0xce1   :  { %v1464_v54 = vpop.f32.mrf.mxu0  ;;  %v2987_v55 = vpop.f32.mrf.mxu1 }
 0xce2   :  { %v1545_v56 = vmul.f32 0.25, %v1464_v54  ;;  %v1548_v57 = vadd.f32 %v1546_v53, %v3295_v34 }
 0xce3   :  { %v2982_v58 = vpop.f32.mrf.mxu0 }
 0xce4   :  { %v1552_v59 = vsel %vm313_vm3, %v1548_v57, -inf  ;;  %v1547_v60 = vadd.f32 %v1545_v56, %v3290_v28 }
 0xce5   :  { %1553 = vmax.xlane.f32.xlu0 %v1552_v59 }
 0xce6   :  { %v1549_v61 = vsel %vm313_vm3, %v1547_v60, -inf }
 0xce7   :  { %1550 = vmax.xlane.f32.xlu1 %v1549_v61 }
 0xcf8   :  { %1647 = vrot.lane.b32.xlu1 %v3467_v48, %s3161_s9 }
 0xcfb   :  { %1571 = vrot.lane.b32.xlu0 %v3470_v50, %s3161_s9 }
 0xcfc   :  { %1725 = vrot.lane.b32.xlu1 %v3470_v50, %s3162_s10 }
 0xd6e   :  { %v1554_v62 = vpop.xlane.xlu0 %1553 }
 0xd6f   :  { %v1556_v63 = vsub.f32 %v1548_v57, %v1554_v62 }
 0xd70   :  { %v1551_v7 = vpop.xlane.xlu1 %1550 }
 0xd71   :  { %v1559_v11 = vmul.f32 1.442695, %v1556_v63  ;;  %v1555_v13 = vsub.f32 %v1547_v60, %v1551_v7 }
 0xd72   :  { %v1572_v16 = vpop.permute.xlu0 %1571 }
 0xd73   :  { %3102 = vpow2.f32 %v1559_v11  ;;  %v1557_v17 = vmul.f32 1.442695, %v1555_v13  ;;  %2989 = vmatpush3.msra.mxu0 %v1572_v16 }
 0xd74   :  { %v1648_v18 = vpop.permute.xlu1 %1647  ;;  %2998 = vmatprep.subr.mxu0 %v3157_v6 }
 0xd75   :  { %3104 = vpow2.f32 %v1557_v17  ;;  %2994 = vmatpush3.msra.mxu1 %v1648_v18 }
 0xd76   :  { %3003 = vmatprep.subr.mxu1 %v3157_v6 }
 0xd78   :  { %v1726_v24 = vpop.permute.xlu1 %1725 }
 0xd80   :  { %v3103_v5 = vpop.eup %3102 }
 0xd81   :  { %v1564_v19 = vsel %vm313_vm3, %v3103_v5, 0.0 }
 0xd82   :  { %v3105_v20 = vpop.eup %3104  ;;  %1565 = vadd.xlane.f32.xlu1 %v1564_v19 }
 0xd83   :  { %v1561_v22 = vsel %vm313_vm3, %v3105_v20, 0.0 }
 0xd84   :  { %1562 = vadd.xlane.f32.xlu0 %v1561_v22 }
 0xd93   :  { %1723 = vrot.lane.b32.xlu1 %v3470_v50, %s3163_s11 }
 0xd9a   :  { %1803 = vrot.lane.b32.xlu0 %v3467_v48, %s3162_s10 }
 0xd9e   :  { %1801 = vrot.lane.b32.xlu0 %v3467_v48, %s3163_s11 }
 0xe0b   :  { %v1566_v26 = vpop.xlane.xlu1 %1565 }
 0xe0c   :  { %3106 = vrcp.f32 %v1566_v26 }
 0xe0d   :  { %v1563_v27 = vpop.xlane.xlu0 %1562 }
 0xe0e   :  { %3108 = vrcp.f32 %v1563_v27 }
 0xe0f   :  { %v1724_v1 = vpop.permute.xlu1 %1723 }
 0xe11   :  { %v1804_v30 = vpop.permute.xlu0 %1803 }
 0xe15   :  { %v1802_v37 = vpop.permute.xlu0 %1801 }
 0xe19   :  { %v3107_v29 = vpop.eup %3106 }
 0xe1a   :  { %v1570_v31 = vmul.f32 %v3107_v29, %v3103_v5 }
 0xe1b   :  { %v3109_v32 = vpop.eup %3108 }
 0xe1c   :  { %2996 = vmatmul.mubr.msk.f32.vlgmr.msra.gmra.mxu1 %vm313_vm3, %v1570_v31  ;;  %v1569_v15 = vmul.f32 %v3109_v32, %v3105_v20 }
 0xe1d   :  { %3004 = vmatpush3.xpose.msk.msra.mxu1 %vm157_vm2, %v1804_v30  ;;  %3005 = vmatprep.mubr.msk.f32.mxu1 %vm3158_vm1, %v3157_v6 }
 0xe1e   :  { %2991 = vmatmul.mubr.msk.f32.vlgmr.msra.gmra.mxu0 %vm313_vm3, %v1569_v15  ;;  %3013 = vmatprep.subr.mxu1 %v3157_v6  ;;  %v3557_v15 = vrot.slane %v3460_v45, %v1037_v2  ;;  %v2762_v2 = vld [vmem:[%s3625_s3 + $0x38] sm:$0xff] }
 0xe1f   :  { %2999 = vmatpush3.xpose.msk.msra.mxu0 %vm157_vm2, %v1726_v24  ;;  %3000 = vmatprep.mubr.msk.f32.mxu0 %vm3158_vm1, %v3157_v6 }
 0xe20   :  { %3006 = vmatmul.mubr.msk.f32.vlgmr.msra.gmra.mxu1 %vm157_vm2, %v1802_v37  ;;  %3008 = vmatprep.subr.mxu0 %v3157_v6 }
 0xe21   :  { %3015 = vmatprep.mubr.msk.f32.mxu1 %vm3158_vm1, %v3157_v6 }
 0xe22   :  { %3001 = vmatmul.mubr.msk.f32.vlgmr.msra.gmra.mxu0 %vm157_vm2, %v1724_v1 }
 0xe23   :  { %3010 = vmatprep.mubr.msk.f32.mxu0 %vm3158_vm1, %v3157_v6 }
 0xedc   :  { %v1719_v12 = vpop.f32.mrf.mxu1 }
 0xede   :  { %v1643_v38 = vpop.f32.mrf.mxu0  ;;  %v2997_v10 = vpop.f32.mrf.mxu1 }
 0xee0   :  { %v2992_v39 = vpop.f32.mrf.mxu0  ;;  %v1875_v40 = vpop.f32.mrf.mxu1 }
 0xee1   :  { %v1880_v41 = vmul.f32 0.25, %v1875_v40 }
 0xee2   :  { %v1797_v42 = vpop.f32.mrf.mxu0  ;;  %v3007_v14 = vpop.f32.mrf.mxu1 }
 0xee3   :  { %v1879_v0 = vmul.f32 0.25, %v1797_v42  ;;  %v1882_v3 = vadd.f32 %v1880_v41, %v3295_v34  ;;  %v2761_v42 = vld [vmem:[%s3625_s3 + $0x30] sm:$0xff]  ;;  %v2760_v14 = vld [vmem:[%s3625_s3 + $0x28] sm:$0xff] }
 0xee4   :  { %v3002_v43 = vpop.f32.mrf.mxu0 }
 0xee5   :  { %v1886_v47 = vsel %vm313_vm3, %v1882_v3, -inf  ;;  %v1881_v49 = vadd.f32 %v1879_v0, %v3290_v28  ;;  %v2759_v0 = vld [vmem:[%s3625_s3 + $0x20] sm:$0xff] }
 0xee6   :  { %1887 = vmax.xlane.f32.xlu0 %v1886_v47 }
 0xee7   :  { %v1883_v51 = vsel %vm313_vm3, %v1881_v49, -inf }
 0xee8   :  { %1884 = vmax.xlane.f32.xlu1 %v1883_v51 }
 0xf6f   :  { %v1888_v52 = vpop.xlane.xlu0 %1887 }
 0xf70   :  { %v1890_v9 = vsub.f32 %v1882_v3, %v1888_v52  ;;  %v2284_v3 = vrot.slane %v3460_v45, %v1049_v25 }
 0xf71   :  { %v1885_v53 = vpop.xlane.xlu1 %1884 }
 0xf72   :  { %v1893_v54 = vmul.f32 1.442695, %v1890_v9  ;;  %v1889_v55 = vsub.f32 %v1881_v49, %v1885_v53 }
 0xf74   :  { %3110 = vpow2.f32 %v1893_v54  ;;  %v1891_v56 = vmul.f32 1.442695, %v1889_v55 }
 0xf76   :  { %3112 = vpow2.f32 %v1891_v56 }
 0xf81   :  { %v3111_v57 = vpop.eup %3110 }
 0xf82   :  { %v1898_v34 = vsel %vm313_vm3, %v3111_v57, 0.0 }
 0xf83   :  { %v3113_v58 = vpop.eup %3112  ;;  %1899 = vadd.xlane.f32.xlu1 %v1898_v34 }
 0xf84   :  { %v1895_v59 = vsel %vm313_vm3, %v3113_v58, 0.0 }
 0xf85   :  { %1896 = vadd.xlane.f32.xlu0 %v1895_v59 }
 0xf94   :  { %1981 = vrot.lane.b32.xlu1 %v3467_v48, %s3164_s12 }
 0xf98   :  { %2061 = vrot.lane.b32.xlu1 %v3417_v33, %s3165_s13 }
 0xf9b   :  { %1905 = vrot.lane.b32.xlu0 %v3470_v50, %s3164_s12 }
 0xf9c   :  { %2059 = vrot.lane.b32.xlu1 %v3428_v35, %s3165_s13 }
 0xf9f   :  { %2150 = vrot.lane.b32.xlu0 %v3435_v36, %s3165_s13 }
 0xfa0   :  { %2236 = vrot.lane.b32.xlu1 %v3464_v46, %s3165_s13 }
 0xfa3   :  { %2148 = vrot.lane.b32.xlu0 %v3441_v21, %s3165_s13 }
0x100c   :  { %v1900_v28 = vpop.xlane.xlu1 %1899 }
0x100d   :  { %3114 = vrcp.f32 %v1900_v28 }
0x100e   :  { %v1897_v48 = vpop.xlane.xlu0 %1896 }
0x100f   :  { %3116 = vrcp.f32 %v1897_v48 }
0x1010   :  { %v1982_v33 = vpop.permute.xlu1 %1981 }
0x1011   :  { %3014 = vmatpush3.msra.mxu1 %v1982_v33 }
0x1012   :  { %v1906_v60 = vpop.permute.xlu0 %1905 }
0x1013   :  { %3009 = vmatpush3.msra.mxu0 %v1906_v60 }
0x1014   :  { %v2062_v50 = vpop.permute.xlu1 %2061 }
0x1015   :  { %3018 = vmatprep.subr.mxu0 %v2062_v50 }
0x1016   :  { %v2151_v35 = vpop.permute.xlu0 %2150 }
0x1017   :  { %3025 = vmatprep.subr.mxu1 %v2151_v35 }
0x1018   :  { %v2060_v21 = vpop.permute.xlu1 %2059 }
0x101a   :  { %v3115_v61 = vpop.eup %3114  ;;  %v2149_v63 = vpop.permute.xlu0 %2148 }
0x101b   :  { %v1904_v36 = vmul.f32 %v3115_v61, %v3111_v57 }
0x101c   :  { %v3117_v62 = vpop.eup %3116  ;;  %v2237_v5 = vpop.permute.xlu1 %2236 }
0x101d   :  { %3016 = vmatmul.mubr.msk.f32.vlgmr.msra.gmra.mxu1 %vm313_vm3, %v1904_v36  ;;  %v1903_v46 = vmul.f32 %v3117_v62, %v3113_v58 }
0x101e   :  { %3026 = vmatpush3.msra.mxu1 %v2151_v35  ;;  %3029 = vmatprep.mubr.msk.f32.mxu1 %vm157_vm2, %v1643_v38 }
0x101f   :  { %3011 = vmatmul.mubr.msk.f32.vlgmr.msra.gmra.mxu0 %vm313_vm3, %v1903_v46  ;;  %3027 = vmatprep.subr.mxu1 %v2149_v63 }
0x1020   :  { %3028 = vmatpush3.msra.mxu1 %v2149_v63  ;;  %3019 = vmatpush3.msra.mxu0 %v2062_v50 }
0x1021   :  { %3030 = vmatmul.mubr.msk.f32.vlgmr.msra.gmra.mxu1 %vm157_vm2, %v1719_v12  ;;  %3020 = vmatprep.subr.mxu0 %v2060_v21 }
0x1022   :  { %3021 = vmatpush3.msra.mxu0 %v2060_v21 }
0x1023   :  { %3032 = vmatprep.subr.mxu0 %v2762_v2 }
0x10dd   :  { %v2053_v7 = vpop.f32.mrf.mxu1 }
0x10df   :  { %v1977_v11 = vpop.f32.mrf.mxu0  ;;  %v3017_v13 = vpop.f32.mrf.mxu1 }
0x10e0   :  { %3022 = vmatprep.mubr.msk.f32.mxu0 %vm157_vm2, %v1977_v11 }
0x10e1   :  { %v3012_v16 = vpop.f32.mrf.mxu0  ;;  %3023 = vmatmul.mubr.msk.f32.vlgmr.msra.gmra.mxu0 %vm157_vm2, %v2053_v7  ;;  %v3031_v17 = vpop.f32.mrf.mxu1 }
0x10e2   :  { %3033 = vmatpush3.msra.mxu0 %v2762_v2 }
0x10e3   :  { %v2226_v20 = vpop.f32.mrf.mxu1  ;;  %3034 = vmatprep.subr.mxu0 %v2761_v42 }
0x10e4   :  { %3035 = vmatpush3.msra.mxu0 %v2761_v42 }
0x10e5   :  { %3036 = vmatprep.subr.mxu0 %v2760_v14 }
0x10e6   :  { %3037 = vmatpush3.msra.mxu0 %v2760_v14 }
0x10e7   :  { %3038 = vmatprep.subr.mxu0 %v2759_v0 }
0x10e8   :  { %3039 = vmatpush3.msra.mxu0 %v2759_v0 }
0x10e9   :  { %3054 = vmatprep.subr.mxu0 %v3157_v6 }
0x11a1   :  { %v3024_v18 = vpop.f32.mrf.mxu0 }
0x11a2   :  { %v2232_v19 = vadd.f32 %v3031_v17, %v3024_v18 }
0x11a3   :  { %v2137_v22 = vpop.f32.mrf.mxu0 }
0x11a4   :  { %v2240_v24 = vadd.f32 %v2237_v5, %v2232_v19  ;;  %v2227_v26 = vadd.f32 %v2226_v20, %v2137_v22 }
0x11a6   :  { %v2239_v27 = vadd.f32 %v2237_v5, %v2227_v26  ;;  %v2242_v29 = vadd.f32 %v2240_v24, %v3449_v44 }
0x11a8   :  { %v2246_v30 = vsel %vm72_vm0, %v2242_v29, 0.0  ;;  %v2241_v31 = vadd.f32 %v2239_v27, %v3447_v4 }
0x11a9   :  { %2247 = vadd.xlane.f32.xlu1 %v2246_v30 }
0x11aa   :  { %v2243_v32 = vsel %vm72_vm0, %v2241_v31, 0.0 }
0x11ab   :  { %2244 = vadd.xlane.f32.xlu0 %v2243_v32 }
0x11ba   :  { %2276 = vrot.lane.b32.xlu1 %v3557_v15, %s3159_s6 }
0x11be   :  { %2392 = vrot.lane.b32.xlu1 %v2761_v42, %s3161_s9 }
0x11c2   :  { %2390 = vrot.lane.b32.xlu1 %v2760_v14, %s3161_s9 }
0x11c6   :  { %2397 = vrot.lane.b32.xlu1 %v2284_v3, %s3161_s9 }
0x1232   :  { %v2248_v37 = vpop.xlane.xlu1 %2247 }
0x1233   :  { %v2250_v1 = vmul.f32 0.03125, %v2248_v37 }
0x1234   :  { %v2245_v12 = vpop.xlane.xlu0 %2244 }
0x1235   :  { %v2249_v44 = vmul.f32 0.03125, %v2245_v12  ;;  %v2252_v38 = vsub.f32 %v2242_v29, %v2250_v1 }
0x1236   :  { %v2277_v55 = vpop.permute.xlu1 %2276 }
0x1237   :  { %v2251_v10 = vsub.f32 %v2241_v31, %v2249_v44  ;;  %v2254_v40 = vmul.f32 %v2252_v38, %v2252_v38 }
0x1239   :  { %v2253_v39 = vmul.f32 %v2251_v10, %v2251_v10  ;;  %v2258_v41 = vsel %vm72_vm0, %v2254_v40, 0.0 }
0x123a   :  { %v2393_v59 = vpop.permute.xlu1 %2392 }
0x123b   :  { %v2255_v4 = vsel %vm72_vm0, %v2253_v39, 0.0 }
0x123c   :  { %2256 = vadd.xlane.f32.xlu0 %v2255_v4 }
0x123e   :  { %v2391_v28 = vpop.permute.xlu1 %2390 }
0x1240   :  { %2259 = vadd.xlane.f32.xlu0 %v2258_v41 }
0x1242   :  { %v2398_v27 = vpop.permute.xlu1 %2397 }
0x1256   :  { %2394 = vrot.lane.b32.xlu0 %v2762_v2, %s3161_s9 }
0x125a   :  { %2388 = vrot.lane.b32.xlu0 %v2759_v0, %s3161_s9 }
0x12c5   :  { %v2257_v43 = vpop.xlane.xlu0 %2256 }
0x12c6   :  { %v2261_v47 = vmul.f32 0.03125, %v2257_v43 }
0x12c8   :  { %v2263_v49 = vadd.f32 1e-12, %v2261_v47 }
0x12c9   :  { %v2260_v51 = vpop.xlane.xlu0 %2259 }
0x12ca   :  { %3118 = vrsqrt.f32 %v2263_v49  ;;  %v2262_v52 = vmul.f32 0.03125, %v2260_v51 }
0x12cc   :  { %v2264_v9 = vadd.f32 1e-12, %v2262_v52 }
0x12cd   :  { %v2395_v58 = vpop.permute.xlu0 %2394 }
0x12ce   :  { %3120 = vrsqrt.f32 %v2264_v9  ;;  %3043 = vmatprep.subr.msk.mxu1 %vm1166_vm4, %v2395_v58 }
0x12cf   :  { %3044 = vmatpush3.xpose.msk.msra.mxu1 %vm1166_vm4, %v2395_v58 }
0x12d0   :  { %3045 = vmatprep.subr.msk.mxu1 %vm1166_vm4, %v2393_v59 }
0x12d1   :  { %v2389_v48 = vpop.permute.xlu0 %2388 }
0x12d3   :  { %3046 = vmatpush3.xpose.msk.msra.mxu1 %vm1166_vm4, %v2393_v59 }
0x12d4   :  { %3047 = vmatprep.subr.msk.mxu1 %vm1166_vm4, %v2391_v28 }
0x12d7   :  { %v3119_v53 = vpop.eup %3118  ;;  %3048 = vmatpush3.xpose.msk.msra.mxu1 %vm1166_vm4, %v2391_v28 }
0x12d8   :  { %v2267_v54 = vmul.f32 %v3119_v53, %v2251_v10  ;;  %3049 = vmatprep.subr.msk.mxu1 %vm1166_vm4, %v2389_v48 }
0x12da   :  { %v2273_v56 = vmul.f32 %v3557_v15, %v2267_v54 }
0x12db   :  { %v3121_v8 = vpop.eup %3120  ;;  %3050 = vmatpush3.xpose.msk.msra.mxu1 %vm1166_vm4, %v2389_v48 }
0x12dc   :  { %v2268_v57 = vmul.f32 %v3121_v8, %v2252_v38  ;;  %v2279_v25 = vadd.f32 %v2277_v55, %v2273_v56 }
0x12de   :  { %v2274_v45 = vmul.f32 %v3557_v15, %v2268_v57  ;;  %3040 = vmatprep.mubr.msk.f32.mxu0 %vm72_vm0, %v2279_v25 }
0x12e0   :  { %v2280_v34 = vadd.f32 %v2277_v55, %v2274_v45 }
0x12e2   :  { %3041 = vmatmul.mubr.msk.f32.vlgmr.msra.gmra.mxu0 %vm72_vm0, %v2280_v34 }
0x12e3   :  { %3056 = vmatprep.mubr.msk.f32.mxu0 %vm3158_vm1, %v3157_v6 }
0x13a2   :  { %v3042_v33 = vpop.f32.mrf.mxu0 }
0x13a3   :  { %v2363_v60 = vadd.f32 %v3042_v33, %v2284_v3 }
0x13a4   :  { %v2357_v50 = vpop.f32.mrf.mxu0 }
0x13a5   :  { %v2367_v35 = vmul.f32 %v2363_v60, %v2363_v60  ;;  %v2358_v61 = vadd.f32 %v2357_v50, %v2284_v3  ;;  %v3134_v3 = vld [vmem:[%s3623_s1] sm:$0x3]  ;;  %s3166_s1 = smov [#allocation2]  }
0x13a6   :  { %v2695_v43 = vsel %vm2694_vm5, %v3134_v3, 0.0  ;;  %v2534_v56 = vrot.slane %v3134_v3, %v3285_v23 }
0x13a7   :  { %v2369_v36 = vmul.f32 %v2367_v35, %v2363_v60  ;;  %v2366_v62 = vmul.f32 %v2358_v61, %v2358_v61 }
0x13a8   :  { %v2542_v45 = vrot.slane %v2534_v56, %v3285_v23 }
0x13a9   :  { %v2371_v63 = vmul.f32 0.044715, %v2369_v36  ;;  %v2368_v46 = vmul.f32 %v2366_v62, %v2358_v61 }
0x13ab   :  { %v2373_v21 = vadd.f32 %v2371_v63, %v2363_v60  ;;  %v2370_v7 = vmul.f32 0.044715, %v2368_v46 }
0x13ad   :  { %v2375_v11 = vmul.f32 0.7978846, %v2373_v21  ;;  %v2372_v13 = vadd.f32 %v2370_v7, %v2358_v61 }
0x13af   :  { %3122 = vtanh.f32 %v2375_v11  ;;  %v2374_v16 = vmul.f32 0.7978846, %v2372_v13 }
0x13b1   :  { %3124 = vtanh.f32 %v2374_v16 }
0x13bc   :  { %v3123_v17 = vpop.eup %3122 }
0x13bd   :  { %v2379_v18 = vadd.f32 1.0, %v3123_v17 }
0x13be   :  { %v3125_v5 = vpop.eup %3124 }
0x13bf   :  { %v2378_v19 = vadd.f32 1.0, %v3125_v5  ;;  %v2381_v20 = vmul.f32 0.5, %v2379_v18 }
0x13c1   :  { %v2380_v22 = vmul.f32 0.5, %v2378_v19  ;;  %v2383_v26 = vmul.f32 %v2381_v20, %v2363_v60 }
0x13c3   :  { %v2382_v24 = vmul.f32 %v2380_v22, %v2358_v61 }
0x13c5   :  { %3051 = vmatprep.mubr.msk.f32.mxu1 %vm1166_vm4, %v2382_v24 }
0x13c6   :  { %3052 = vmatmul.mubr.msk.f32.vlgmr.msra.gmra.mxu1 %vm1166_vm4, %v2383_v26 }
0x1486   :  { %v3053_v29 = vpop.f32.mrf.mxu1 }
0x1487   :  { %v2486_v30 = vadd.f32 %v3053_v29, %v2398_v27 }
0x1488   :  { %v2480_v31 = vpop.f32.mrf.mxu1 }
0x1489   :  { %v2481_v32 = vadd.f32 %v2480_v31, %v2398_v27  ;;  %v2490_v37 = vadd.f32 %v2486_v30, %v2280_v34  ;;  %v2535_v34 = vcombine.high %v2534_v56, %v2534_v56 }
0x148b   :  { %v2494_v1 = vsel %vm72_vm0, %v2490_v37, 0.0  ;;  %v2489_v12 = vadd.f32 %v2481_v32, %v2279_v25  ;;  %v2549_v48 = vrot.slane %v2535_v34, %v3285_v23 }
0x148c   :  { %2495 = vadd.xlane.f32.xlu1 %v2494_v1 }
0x148d   :  { %v2491_v44 = vsel %vm72_vm0, %v2489_v12, 0.0 }
0x148e   :  { %2492 = vadd.xlane.f32.xlu0 %v2491_v44 }
0x149d   :  { %2517 = vrot.lane.b32.xlu1 %v3557_v15, %s3161_s9 }
0x14c1   :  { %2696 = vadd.xlane.f32.xlu1 %v2695_v43 }
0x1515   :  { %v2496_v38 = vpop.xlane.xlu1 %2495 }
0x1516   :  { %v2498_v10 = vmul.f32 0.03125, %v2496_v38 }
0x1517   :  { %v2493_v39 = vpop.xlane.xlu0 %2492 }
0x1518   :  { %v2497_v4 = vmul.f32 0.03125, %v2493_v39  ;;  %v2500_v40 = vsub.f32 %v2490_v37, %v2498_v10 }
0x1519   :  { %v2518_v55 = vpop.permute.xlu1 %2517 }
0x151a   :  { %v2499_v41 = vsub.f32 %v2489_v12, %v2497_v4  ;;  %v2502_v14 = vmul.f32 %v2500_v40, %v2500_v40 }
0x151c   :  { %v2501_v2 = vmul.f32 %v2499_v41, %v2499_v41  ;;  %v2506_v0 = vsel %vm72_vm0, %v2502_v14, 0.0 }
0x151e   :  { %v2503_v42 = vsel %vm72_vm0, %v2501_v2, 0.0 }
0x151f   :  { %2504 = vadd.xlane.f32.xlu0 %v2503_v42 }
0x1523   :  { %2507 = vadd.xlane.f32.xlu0 %v2506_v0 }
0x1539   :  { %2522 = vrot.lane.b32.xlu0 %v3557_v15, %s3165_s13  ;;  %s2721_s13 = sshll.u32 %s3166_s1, 4  ;;  %s2722_s13 = int_to_ptr.vmem [resolvable:$true] %s2721_s13 }
0x153a   :  { %s3135_s14 = scalar_lea.vmem %s2722_s13, 32  ;;  %p3140_p1 = scmp.lt.s32.totalorder %s2722_s13, %s2722_s13 }
0x153b   :  { %p3136_p0 = scmp.ne.s32.totalorder %s2722_s13, %s3135_s14  ;;  %p3141_p2 = scmp.lt.s32.totalorder %s3135_s14, %s3135_s14 }
0x153d   :  { %p3142_p3 = por %p3141_p2, %p3140_p1 }
0x153f   :  { %p3143_p4 = pnand %p3142_p3, %p3136_p0 }
0x154a   :  { %v2697_v60 = vpop.xlane.xlu1 %2696 }
0x154b   :  { %v2698_v50 = vmax.f32 %v2697_v60, 1e-09 }
0x154d   :  { %v2700_v35 = vrot.slane %v2698_v50, 1 }
0x15a8   :  { %v2505_v47 = vpop.xlane.xlu0 %2504 }
0x15a9   :  { %v2509_v49 = vmul.f32 0.03125, %v2505_v47 }
0x15ab   :  { %v2511_v51 = vadd.f32 1e-12, %v2509_v49 }
0x15ac   :  { %v2508_v52 = vpop.xlane.xlu0 %2507 }
0x15ad   :  { %3126 = vrsqrt.f32 %v2511_v51  ;;  %v2510_v9 = vmul.f32 0.03125, %v2508_v52 }
0x15af   :  { %v2512_v53 = vadd.f32 1e-12, %v2510_v9 }
0x15b0   :  { %v2523_v8 = vpop.permute.xlu0 %2522 }
0x15b1   :  { %3128 = vrsqrt.f32 %v2512_v53 }
0x15b2   :  { %3130 = vrcp.f32 %v2700_v35 }
0x15b3   :  { %3132 = vrcp.f32 %v2698_v50 }
0x15ba   :  { %v3127_v54 = vpop.eup %3126 }
0x15bb   :  { %v2515_v15 = vmul.f32 %v3127_v54, %v2499_v41 }
0x15bd   :  { %v2520_v57 = vmul.f32 %v2518_v55, %v2515_v15 }
0x15be   :  { %v3129_v25 = vpop.eup %3128 }
0x15bf   :  { %v2516_v58 = vmul.f32 %v3129_v25, %v2500_v40  ;;  %v2525_v59 = vadd.f32 %v2523_v8, %v2520_v57  ;;  %v3131_v36 = vpop.eup %3130 }
0x15c0   :  { %v3133_v63 = vpop.eup %3132 }
0x15c1   :  { %v2521_v28 = vmul.f32 %v2518_v55, %v2516_v58  ;;  %3055 = vmatpush3.msra.mxu0 %v2525_v59 }
0x15c2   :  { %3057 = vmatmul.mubr.msk.f32.vlgmr.msra.gmra.mxu0 %vm313_vm3, %v2542_v45  ;;  %3059 = vmatprep.subr.mxu0 %v3157_v6 }
0x15c3   :  { %v2526_v33 = vadd.f32 %v2523_v8, %v2521_v28  ;;  %3061 = vmatprep.mubr.msk.f32.mxu0 %vm3158_vm1, %v3157_v6 }
0x15c5   :  { %3060 = vmatpush3.msra.mxu0 %v2526_v33 }
0x15c6   :  { %3062 = vmatmul.mubr.msk.f32.vlgmr.msra.gmra.mxu0 %vm313_vm3, %v2549_v48 }
0x1682   :  { %v2618_v61 = vpop.f32.mrf.mxu0 }
0x1683   :  { %v2704_v7 = vmul.f32 %v3133_v63, %v2618_v61 }
0x1684   :  { %v3058_v62 = vpop.f32.mrf.mxu0 }
0x1686   :  { %v2690_v46 = vpop.f32.mrf.mxu0 }
0x1687   :  { %v2706_v21 = vmul.f32 %v3131_v36, %v2690_v46 }
0x1688   :  { %v3063_v23 = vpop.f32.mrf.mxu0 }
0x1689   :  { %v2709_v6 = vrot.slane %v2706_v21, 7 }
0x168b   :  { %v2711_v11 = vsel %vm2710_vm6, %v2709_v6, %v2704_v7 }
0x168c   :  { %2714 = vst.msk [vmem:[#allocation2] sm:$0x3] %vm2713_vm7, %v2711_v11 }
0x168d   :  { %3146 = shalt.err (!%p3143_p4)
}
0x168e   :  { %2724 = dma.vmem_to_hbm [thread:$0]  %s2722_s13, 32, %s3627_s5, [#allocation3]  }
0x168f   :  { %3155 = dma.done.wait [#allocation3], 32  }
0x1690   :  { %3156 = vsyncadd [#allocation3], 4294967264 }
0x1691   :  { %2728 = vsyncpa [#allocation3], 1 }

</bundles_post_ra>
